<compile_context>
chip_gen: v7x
topology: tpu7x:2x2x1
jax: 0.10.0
libtpu: 0.0.40
codegen_flags: <defaults>
</compile_context>

<pallas_src>
import jax
import jax.numpy as jnp
from jax import lax
from jax.experimental import pallas as pl
from jax.experimental.pallas import tpu as pltpu


def fasttext_kernel(tok_ref, ng_ref, len_ref,      # VMEM: ids + lengths
                    tfw_ref, ngfw_ref, b_ref,      # VMEM: fused (table @ W) + bias
                    out_ref):                      # VMEM: [TB, C_pad] logits
    TB, S_tok = tok_ref.shape
    _, S_ng = ng_ref.shape
    V_tok = tfw_ref.shape[0]
    V_ng = ngfw_ref.shape[0]

    tok_ids = tok_ref[...]   # [TB, S_tok] int32
    ng_ids = ng_ref[...]     # [TB, S_ng]  int32

    # Lane iotas over the (padded) vocab axes.
    vt_iota = lax.broadcasted_iota(jnp.int32, (1, V_tok), 1)
    vn_iota = lax.broadcasted_iota(jnp.int32, (1, V_ng), 1)

    # One-hot histograms: counts[b, v] = #occurrences of id v in doc b.
    # Statically unrolled over the (small) sequence length; each step is a
    # full [TB, V_pad] vreg compare + add on the VPU.
    counts_tok = jnp.zeros((TB, V_tok), jnp.float32)
    for s in range(S_tok):
        counts_tok = counts_tok + (tok_ids[:, s:s + 1] == vt_iota).astype(jnp.float32)

    counts_ng = jnp.zeros((TB, V_ng), jnp.float32)
    for s in range(S_ng):
        counts_ng = counts_ng + (ng_ids[:, s:s + 1] == vn_iota).astype(jnp.float32)

    # EmbeddingBag(SUM) + Linear folded into a single MXU matmul per feature:
    # counts (bf16, exact small ints) @ (table @ W) (bf16), f32 accumulation.
    # Padding id 0 hits the zeroed padding row, so padded positions add 0.
    logits = jnp.dot(counts_tok.astype(jnp.bfloat16), tfw_ref[...],
                     preferred_element_type=jnp.float32)
    logits = logits + jnp.dot(counts_ng.astype(jnp.bfloat16), ngfw_ref[...],
                              preferred_element_type=jnp.float32)

    # Divide by total (token + ngram) length.  Clamp to >= 1 so an all-padding
    # document does not produce inf/NaN (identical for non-empty documents).
    inv_len = pl.reciprocal(jnp.maximum(len_ref[...], 1.0), approx=True)  # [TB, 1]

    # dropout(p=hidden_layer_dropout) is identity at inference time.
    out_ref[...] = logits * inv_len + b_ref[...]


def _round_up(x, m):
    return (x + m - 1) // m * m


def _choose_batch_tile(B):
    b8 = _round_up(B, 8)
    if b8 <= 8:
        return 8
    # Cap at 256 MXU rows (v6e/v7x) and keep >= 2 batch tiles when possible so
    # the "parallel" batch axis can shard across TensorCores on v7x.
    return min(256, _round_up(pl.cdiv(b8, 2), 8))


def _pallas_forward(tok_p, ng_p, len_p, tfw_p, ngfw_p, b_p, *,
                    batch_tile, single_buffer_tables, vmem_limit, cost):
    B_pad, S_tok = tok_p.shape
    _, S_ng = ng_p.shape
    V_tok_pad, C_pad = tfw_p.shape
    V_ng_pad = ngfw_p.shape[0]
    grid = (B_pad // batch_tile,)

    def const_spec(shape):
        # Grid-invariant operand: same block every step -> single buffer.
        if single_buffer_tables:
            return pl.BlockSpec(shape, lambda i: (0, 0), pipeline_mode=pl.Buffered(1))
        return pl.BlockSpec(shape, lambda i: (0, 0))

    return pl.pallas_call(
        fasttext_kernel,
        out_shape=jax.ShapeDtypeStruct((B_pad, C_pad), jnp.float32),
        grid_spec=pltpu.PrefetchScalarGridSpec(
            num_scalar_prefetch=0,
            grid=grid,
            in_specs=[
                pl.BlockSpec((batch_tile, S_tok), lambda i: (i, 0)),   # token ids
                pl.BlockSpec((batch_tile, S_ng), lambda i: (i, 0)),    # ngram ids
                pl.BlockSpec((batch_tile, 1), lambda i: (i, 0)),       # lengths
                const_spec((V_tok_pad, C_pad)),                        # fused token table
                const_spec((V_ng_pad, C_pad)),                         # fused ngram table
                const_spec((1, C_pad)),                                # bias
            ],
            out_specs=pl.BlockSpec((batch_tile, C_pad), lambda i: (i, 0)),
        ),
        compiler_params=pltpu.CompilerParams(
            dimension_semantics=("parallel",),   # shard batch tiles across TCs (v7x)
            vmem_limit_bytes=vmem_limit,
        ),
        cost_estimate=cost,
    )(tok_p, ng_p, len_p, tfw_p, ngfw_p, b_p)


def fasttext_forward(tok, ng, length, temb, ngemb, w, b, *,
                     padding_idx=0, batch_tile=None):
    """tok [B,S_tok] i32, ng [B,S_ng] i32, length [B] f32,
    temb [V_tok,D] f32, ngemb [V_ng,D] f32, w [D,C] f32, b [C] f32 -> [B,C] f32.

    Ids must lie in [0, V); out-of-range ids silently contribute nothing
    (one-hot compare never matches), unlike PyTorch which would error.
    """
    B, S_tok = tok.shape
    _, S_ng = ng.shape
    V_tok, D = temb.shape
    V_ng, _ = ngemb.shape
    C = w.shape[1]

    # Enforce EmbeddingBag padding_idx semantics here (contribution is zero
    # regardless of what the caller stored in that row).
    temb = temb.astype(jnp.float32).at[padding_idx].set(0.0)
    ngemb = ngemb.astype(jnp.float32).at[padding_idx].set(0.0)

    # Inference-only structural fold: (counts @ T) @ W == counts @ (T @ W).
    tfw = jnp.dot(temb, w.astype(jnp.float32))      # [V_tok, C] f32
    ngfw = jnp.dot(ngemb, w.astype(jnp.float32))    # [V_ng,  C] f32

    # Lane/sublane-friendly padding.
    if batch_tile is None:
        batch_tile = _choose_batch_tile(B)
    else:
        batch_tile = _round_up(max(batch_tile, 8), 8)
    B_pad = _round_up(max(B, batch_tile), batch_tile)
    C_pad = _round_up(C, 128)
    V_tok_pad = _round_up(V_tok, 128)
    V_ng_pad = _round_up(V_ng, 128)

    tok_p = jnp.zeros((B_pad, S_tok), jnp.int32).at[:B].set(tok.astype(jnp.int32))
    ng_p = jnp.zeros((B_pad, S_ng), jnp.int32).at[:B].set(ng.astype(jnp.int32))
    len_p = jnp.ones((B_pad, 1), jnp.float32).at[:B, 0].set(length.astype(jnp.float32))
    tfw_p = jnp.zeros((V_tok_pad, C_pad), jnp.bfloat16).at[:V_tok, :C].set(
        tfw.astype(jnp.bfloat16))
    ngfw_p = jnp.zeros((V_ng_pad, C_pad), jnp.bfloat16).at[:V_ng, :C].set(
        ngfw.astype(jnp.bfloat16))
    b_p = jnp.zeros((1, C_pad), jnp.float32).at[0, :C].set(b.astype(jnp.float32))

    # VMEM budget (single-buffered tables + double-buffered per-tile I/O +
    # intermediates) with 2x headroom, clamped below v7x's 64 MiB physical.
    tables_bytes = (V_tok_pad + V_ng_pad) * C_pad * 2 + C_pad * 4
    tile_io_bytes = 2 * (batch_tile * (S_tok + S_ng + 1) * 4 + batch_tile * C_pad * 4)
    interm_bytes = batch_tile * (V_tok_pad + V_ng_pad) * 6 + batch_tile * C_pad * 4
    vmem_limit = int(min(max(2 * (tables_bytes + tile_io_bytes + interm_bytes),
                             32 * 2**20), 60 * 2**20))

    cost = pl.CostEstimate(
        flops=int(2 * B_pad * C_pad * (V_tok_pad + V_ng_pad)
                  + 2 * B_pad * (S_tok * V_tok_pad + S_ng * V_ng_pad)),
        transcendentals=int(B_pad),
        bytes_accessed=int((V_tok_pad + V_ng_pad) * C_pad * 2
                           + B_pad * (S_tok + S_ng + 1) * 4
                           + B_pad * C_pad * 4 + C_pad * 4),
    )

    try:
        out = _pallas_forward(tok_p, ng_p, len_p, tfw_p, ngfw_p, b_p,
                              batch_tile=batch_tile,
                              single_buffer_tables=True,
                              vmem_limit=vmem_limit, cost=cost)
        out = jax.block_until_ready(out)
    except Exception:
        # Fallback: default double-buffering if pl.Buffered(1) is rejected.
        out = _pallas_forward(tok_p, ng_p, len_p, tfw_p, ngfw_p, b_p,
                              batch_tile=batch_tile,
                              single_buffer_tables=False,
                              vmem_limit=vmem_limit, cost=cost)

    return out[:B, :C]


def reference_forward(tok, ng, length, temb, ngemb, w, b):
    doc = temb[tok].sum(axis=1) + ngemb[ng].sum(axis=1)
    doc = doc / length[:, None]
    return doc @ w + b


if __name__ == "__main__":
    # Small deterministic config (synthetic): vocab sizes, embedding dim, num labels.
    B, S_TOK, S_NG = 2, 8, 12
    V_TOK, V_NG, D, C = 50, 80, 32, 8
    PAD = 0  # dataset.VOCAB_PADDING

    key = jax.random.PRNGKey(0)
    k_tok, k_ng, k_temb, k_ngemb, k_w, k_b = jax.random.split(key, 6)

    # Token / ngram ids, padded with PAD=0 at the tail of each row.
    tok = jax.random.randint(k_tok, (B, S_TOK), 1, V_TOK, dtype=jnp.int32)
    ng = jax.random.randint(k_ng, (B, S_NG), 1, V_NG, dtype=jnp.int32)
    tok = tok.at[0, 6:].set(PAD).at[1, 5:].set(PAD)
    ng = ng.at[0, 9:].set(PAD).at[1, 7:].set(PAD)

    tok_len = jnp.sum(tok != PAD, axis=1)
    ng_len = jnp.sum(ng != PAD, axis=1)
    length = (tok_len + ng_len).astype(jnp.float32)  # DOC_TOKEN_LEN + DOC_TOKEN_NGRAM_LEN

    # Embedding tables: uniform(-bound, bound), padding row zeroed (padding_idx).
    bound = 0.25
    temb = jax.random.uniform(k_temb, (V_TOK, D), jnp.float32, -bound, bound)
    temb = temb.at[PAD].set(0.0)
    ngemb = jax.random.uniform(k_ngemb, (V_NG, D), jnp.float32, -bound, bound)
    ngemb = ngemb.at[PAD].set(0.0)

    # Linear(D -> C): weight stored transposed [D, C]; bias [C].
    w = jax.random.uniform(k_w, (D, C), jnp.float32, -0.1, 0.1)
    b = jax.random.uniform(k_b, (C,), jnp.float32, -0.1, 0.1)

    logits = fasttext_forward(tok, ng, length, temb, ngemb, w, b, padding_idx=PAD)
    logits = jax.block_until_ready(logits)

    ref = reference_forward(tok, ng, length, temb, ngemb, w, b)
    assert logits.shape == (B, C)
    # bf16 fused tables + approx reciprocal -> slightly looser tolerance than f32.
    assert jnp.allclose(logits, ref, atol=2e-2, rtol=2e-2), (
        f"max abs err = {jnp.max(jnp.abs(logits - ref))}")

    print("KERNEL_OK")
</pallas_src>

<mosaic_0001>
module attributes {stable_mosaic.version = 11 : i64} {
  func.func @fasttext_kernel(%arg0: i32, %arg1: memref<8x8xi32, #tpu.memory_space<vmem>>, %arg2: memref<8x12xi32, #tpu.memory_space<vmem>>, %arg3: memref<8x1xf32, #tpu.memory_space<vmem>>, %arg4: memref<128x128xbf16, #tpu.memory_space<vmem>>, %arg5: memref<128x128xbf16, #tpu.memory_space<vmem>>, %arg6: memref<1x128xf32, #tpu.memory_space<vmem>>, %arg7: memref<8x128xf32, #tpu.memory_space<vmem>>) attributes {dimension_semantics = [#tpu.dimension_semantics<parallel>], iteration_bounds = array<i64: 1>, scalar_prefetch = 0 : i64, scratch_operands = 0 : i64, tpu.core_type = #tpu.core_type<tc>, window_params = [{transform_indices = @transform_0, window_bounds = array<i64: 8, 8>}, {transform_indices = @transform_1, window_bounds = array<i64: 8, 12>}, {transform_indices = @transform_2, window_bounds = array<i64: 8, 1>}, {pipeline_mode = #tpu.pipeline_mode<synchronous>, transform_indices = @transform_3, window_bounds = array<i64: 128, 128>}, {pipeline_mode = #tpu.pipeline_mode<synchronous>, transform_indices = @transform_4, window_bounds = array<i64: 128, 128>}, {pipeline_mode = #tpu.pipeline_mode<synchronous>, transform_indices = @transform_5, window_bounds = array<i64: 1, 128>}, {transform_indices = @transform_6, window_bounds = array<i64: 8, 128>}]} {
    %c0 = arith.constant 0 : index
    %c0_0 = arith.constant 0 : index
    %0 = vector.load %arg1[%c0, %c0_0] : memref<8x8xi32, #tpu.memory_space<vmem>>, vector<8x8xi32>
    %c0_1 = arith.constant 0 : index
    %c0_2 = arith.constant 0 : index
    %1 = vector.load %arg2[%c0_1, %c0_2] : memref<8x12xi32, #tpu.memory_space<vmem>>, vector<8x12xi32>
    %2 = tpu.iota {dimensions = array<i32: 1>} : vector<1x128xi32>
    %3 = tpu.iota {dimensions = array<i32: 1>} : vector<1x128xi32>
    %cst = arith.constant 0.000000e+00 : f32
    %4 = vector.broadcast %cst : f32 to vector<8x128xf32>
    %5 = vector.extract_strided_slice %0 {offsets = [0, 0], sizes = [8, 1], strides = [1, 1]} : vector<8x8xi32> to vector<8x1xi32>
    %6 = vector.broadcast %5 : vector<8x1xi32> to vector<8x128xi32>
    %7 = vector.broadcast %2 : vector<1x128xi32> to vector<8x128xi32>
    %8 = arith.cmpi eq, %6, %7 : vector<8x128xi32>
    %9 = arith.extui %8 : vector<8x128xi1> to vector<8x128xi32>
    %10 = arith.sitofp %9 : vector<8x128xi32> to vector<8x128xf32>
    %11 = arith.addf %4, %10 : vector<8x128xf32>
    %12 = vector.extract_strided_slice %0 {offsets = [0, 1], sizes = [8, 1], strides = [1, 1]} : vector<8x8xi32> to vector<8x1xi32>
    %13 = vector.broadcast %12 : vector<8x1xi32> to vector<8x128xi32>
    %14 = vector.broadcast %2 : vector<1x128xi32> to vector<8x128xi32>
    %15 = arith.cmpi eq, %13, %14 : vector<8x128xi32>
    %16 = arith.extui %15 : vector<8x128xi1> to vector<8x128xi32>
    %17 = arith.sitofp %16 : vector<8x128xi32> to vector<8x128xf32>
    %18 = arith.addf %11, %17 : vector<8x128xf32>
    %19 = vector.extract_strided_slice %0 {offsets = [0, 2], sizes = [8, 1], strides = [1, 1]} : vector<8x8xi32> to vector<8x1xi32>
    %20 = vector.broadcast %19 : vector<8x1xi32> to vector<8x128xi32>
    %21 = vector.broadcast %2 : vector<1x128xi32> to vector<8x128xi32>
    %22 = arith.cmpi eq, %20, %21 : vector<8x128xi32>
    %23 = arith.extui %22 : vector<8x128xi1> to vector<8x128xi32>
    %24 = arith.sitofp %23 : vector<8x128xi32> to vector<8x128xf32>
    %25 = arith.addf %18, %24 : vector<8x128xf32>
    %26 = vector.extract_strided_slice %0 {offsets = [0, 3], sizes = [8, 1], strides = [1, 1]} : vector<8x8xi32> to vector<8x1xi32>
    %27 = vector.broadcast %26 : vector<8x1xi32> to vector<8x128xi32>
    %28 = vector.broadcast %2 : vector<1x128xi32> to vector<8x128xi32>
    %29 = arith.cmpi eq, %27, %28 : vector<8x128xi32>
    %30 = arith.extui %29 : vector<8x128xi1> to vector<8x128xi32>
    %31 = arith.sitofp %30 : vector<8x128xi32> to vector<8x128xf32>
    %32 = arith.addf %25, %31 : vector<8x128xf32>
    %33 = vector.extract_strided_slice %0 {offsets = [0, 4], sizes = [8, 1], strides = [1, 1]} : vector<8x8xi32> to vector<8x1xi32>
    %34 = vector.broadcast %33 : vector<8x1xi32> to vector<8x128xi32>
    %35 = vector.broadcast %2 : vector<1x128xi32> to vector<8x128xi32>
    %36 = arith.cmpi eq, %34, %35 : vector<8x128xi32>
    %37 = arith.extui %36 : vector<8x128xi1> to vector<8x128xi32>
    %38 = arith.sitofp %37 : vector<8x128xi32> to vector<8x128xf32>
    %39 = arith.addf %32, %38 : vector<8x128xf32>
    %40 = vector.extract_strided_slice %0 {offsets = [0, 5], sizes = [8, 1], strides = [1, 1]} : vector<8x8xi32> to vector<8x1xi32>
    %41 = vector.broadcast %40 : vector<8x1xi32> to vector<8x128xi32>
    %42 = vector.broadcast %2 : vector<1x128xi32> to vector<8x128xi32>
    %43 = arith.cmpi eq, %41, %42 : vector<8x128xi32>
    %44 = arith.extui %43 : vector<8x128xi1> to vector<8x128xi32>
    %45 = arith.sitofp %44 : vector<8x128xi32> to vector<8x128xf32>
    %46 = arith.addf %39, %45 : vector<8x128xf32>
    %47 = vector.extract_strided_slice %0 {offsets = [0, 6], sizes = [8, 1], strides = [1, 1]} : vector<8x8xi32> to vector<8x1xi32>
    %48 = vector.broadcast %47 : vector<8x1xi32> to vector<8x128xi32>
    %49 = vector.broadcast %2 : vector<1x128xi32> to vector<8x128xi32>
    %50 = arith.cmpi eq, %48, %49 : vector<8x128xi32>
    %51 = arith.extui %50 : vector<8x128xi1> to vector<8x128xi32>
    %52 = arith.sitofp %51 : vector<8x128xi32> to vector<8x128xf32>
    %53 = arith.addf %46, %52 : vector<8x128xf32>
    %54 = vector.extract_strided_slice %0 {offsets = [0, 7], sizes = [8, 1], strides = [1, 1]} : vector<8x8xi32> to vector<8x1xi32>
    %55 = vector.broadcast %54 : vector<8x1xi32> to vector<8x128xi32>
    %56 = vector.broadcast %2 : vector<1x128xi32> to vector<8x128xi32>
    %57 = arith.cmpi eq, %55, %56 : vector<8x128xi32>
    %58 = arith.extui %57 : vector<8x128xi1> to vector<8x128xi32>
    %59 = arith.sitofp %58 : vector<8x128xi32> to vector<8x128xf32>
    %60 = arith.addf %53, %59 : vector<8x128xf32>
    %cst_3 = arith.constant 0.000000e+00 : f32
    %61 = vector.broadcast %cst_3 : f32 to vector<8x128xf32>
    %62 = vector.extract_strided_slice %1 {offsets = [0, 0], sizes = [8, 1], strides = [1, 1]} : vector<8x12xi32> to vector<8x1xi32>
    %63 = vector.broadcast %62 : vector<8x1xi32> to vector<8x128xi32>
    %64 = vector.broadcast %3 : vector<1x128xi32> to vector<8x128xi32>
    %65 = arith.cmpi eq, %63, %64 : vector<8x128xi32>
    %66 = arith.extui %65 : vector<8x128xi1> to vector<8x128xi32>
    %67 = arith.sitofp %66 : vector<8x128xi32> to vector<8x128xf32>
    %68 = arith.addf %61, %67 : vector<8x128xf32>
    %69 = vector.extract_strided_slice %1 {offsets = [0, 1], sizes = [8, 1], strides = [1, 1]} : vector<8x12xi32> to vector<8x1xi32>
    %70 = vector.broadcast %69 : vector<8x1xi32> to vector<8x128xi32>
    %71 = vector.broadcast %3 : vector<1x128xi32> to vector<8x128xi32>
    %72 = arith.cmpi eq, %70, %71 : vector<8x128xi32>
    %73 = arith.extui %72 : vector<8x128xi1> to vector<8x128xi32>
    %74 = arith.sitofp %73 : vector<8x128xi32> to vector<8x128xf32>
    %75 = arith.addf %68, %74 : vector<8x128xf32>
    %76 = vector.extract_strided_slice %1 {offsets = [0, 2], sizes = [8, 1], strides = [1, 1]} : vector<8x12xi32> to vector<8x1xi32>
    %77 = vector.broadcast %76 : vector<8x1xi32> to vector<8x128xi32>
    %78 = vector.broadcast %3 : vector<1x128xi32> to vector<8x128xi32>
    %79 = arith.cmpi eq, %77, %78 : vector<8x128xi32>
    %80 = arith.extui %79 : vector<8x128xi1> to vector<8x128xi32>
    %81 = arith.sitofp %80 : vector<8x128xi32> to vector<8x128xf32>
    %82 = arith.addf %75, %81 : vector<8x128xf32>
    %83 = vector.extract_strided_slice %1 {offsets = [0, 3], sizes = [8, 1], strides = [1, 1]} : vector<8x12xi32> to vector<8x1xi32>
    %84 = vector.broadcast %83 : vector<8x1xi32> to vector<8x128xi32>
    %85 = vector.broadcast %3 : vector<1x128xi32> to vector<8x128xi32>
    %86 = arith.cmpi eq, %84, %85 : vector<8x128xi32>
    %87 = arith.extui %86 : vector<8x128xi1> to vector<8x128xi32>
    %88 = arith.sitofp %87 : vector<8x128xi32> to vector<8x128xf32>
    %89 = arith.addf %82, %88 : vector<8x128xf32>
    %90 = vector.extract_strided_slice %1 {offsets = [0, 4], sizes = [8, 1], strides = [1, 1]} : vector<8x12xi32> to vector<8x1xi32>
    %91 = vector.broadcast %90 : vector<8x1xi32> to vector<8x128xi32>
    %92 = vector.broadcast %3 : vector<1x128xi32> to vector<8x128xi32>
    %93 = arith.cmpi eq, %91, %92 : vector<8x128xi32>
    %94 = arith.extui %93 : vector<8x128xi1> to vector<8x128xi32>
    %95 = arith.sitofp %94 : vector<8x128xi32> to vector<8x128xf32>
    %96 = arith.addf %89, %95 : vector<8x128xf32>
    %97 = vector.extract_strided_slice %1 {offsets = [0, 5], sizes = [8, 1], strides = [1, 1]} : vector<8x12xi32> to vector<8x1xi32>
    %98 = vector.broadcast %97 : vector<8x1xi32> to vector<8x128xi32>
    %99 = vector.broadcast %3 : vector<1x128xi32> to vector<8x128xi32>
    %100 = arith.cmpi eq, %98, %99 : vector<8x128xi32>
    %101 = arith.extui %100 : vector<8x128xi1> to vector<8x128xi32>
    %102 = arith.sitofp %101 : vector<8x128xi32> to vector<8x128xf32>
    %103 = arith.addf %96, %102 : vector<8x128xf32>
    %104 = vector.extract_strided_slice %1 {offsets = [0, 6], sizes = [8, 1], strides = [1, 1]} : vector<8x12xi32> to vector<8x1xi32>
    %105 = vector.broadcast %104 : vector<8x1xi32> to vector<8x128xi32>
    %106 = vector.broadcast %3 : vector<1x128xi32> to vector<8x128xi32>
    %107 = arith.cmpi eq, %105, %106 : vector<8x128xi32>
    %108 = arith.extui %107 : vector<8x128xi1> to vector<8x128xi32>
    %109 = arith.sitofp %108 : vector<8x128xi32> to vector<8x128xf32>
    %110 = arith.addf %103, %109 : vector<8x128xf32>
    %111 = vector.extract_strided_slice %1 {offsets = [0, 7], sizes = [8, 1], strides = [1, 1]} : vector<8x12xi32> to vector<8x1xi32>
    %112 = vector.broadcast %111 : vector<8x1xi32> to vector<8x128xi32>
    %113 = vector.broadcast %3 : vector<1x128xi32> to vector<8x128xi32>
    %114 = arith.cmpi eq, %112, %113 : vector<8x128xi32>
    %115 = arith.extui %114 : vector<8x128xi1> to vector<8x128xi32>
    %116 = arith.sitofp %115 : vector<8x128xi32> to vector<8x128xf32>
    %117 = arith.addf %110, %116 : vector<8x128xf32>
    %118 = vector.extract_strided_slice %1 {offsets = [0, 8], sizes = [8, 1], strides = [1, 1]} : vector<8x12xi32> to vector<8x1xi32>
    %119 = vector.broadcast %118 : vector<8x1xi32> to vector<8x128xi32>
    %120 = vector.broadcast %3 : vector<1x128xi32> to vector<8x128xi32>
    %121 = arith.cmpi eq, %119, %120 : vector<8x128xi32>
    %122 = arith.extui %121 : vector<8x128xi1> to vector<8x128xi32>
    %123 = arith.sitofp %122 : vector<8x128xi32> to vector<8x128xf32>
    %124 = arith.addf %117, %123 : vector<8x128xf32>
    %125 = vector.extract_strided_slice %1 {offsets = [0, 9], sizes = [8, 1], strides = [1, 1]} : vector<8x12xi32> to vector<8x1xi32>
    %126 = vector.broadcast %125 : vector<8x1xi32> to vector<8x128xi32>
    %127 = vector.broadcast %3 : vector<1x128xi32> to vector<8x128xi32>
    %128 = arith.cmpi eq, %126, %127 : vector<8x128xi32>
    %129 = arith.extui %128 : vector<8x128xi1> to vector<8x128xi32>
    %130 = arith.sitofp %129 : vector<8x128xi32> to vector<8x128xf32>
    %131 = arith.addf %124, %130 : vector<8x128xf32>
    %132 = vector.extract_strided_slice %1 {offsets = [0, 10], sizes = [8, 1], strides = [1, 1]} : vector<8x12xi32> to vector<8x1xi32>
    %133 = vector.broadcast %132 : vector<8x1xi32> to vector<8x128xi32>
    %134 = vector.broadcast %3 : vector<1x128xi32> to vector<8x128xi32>
    %135 = arith.cmpi eq, %133, %134 : vector<8x128xi32>
    %136 = arith.extui %135 : vector<8x128xi1> to vector<8x128xi32>
    %137 = arith.sitofp %136 : vector<8x128xi32> to vector<8x128xf32>
    %138 = arith.addf %131, %137 : vector<8x128xf32>
    %139 = vector.extract_strided_slice %1 {offsets = [0, 11], sizes = [8, 1], strides = [1, 1]} : vector<8x12xi32> to vector<8x1xi32>
    %140 = vector.broadcast %139 : vector<8x1xi32> to vector<8x128xi32>
    %141 = vector.broadcast %3 : vector<1x128xi32> to vector<8x128xi32>
    %142 = arith.cmpi eq, %140, %141 : vector<8x128xi32>
    %143 = arith.extui %142 : vector<8x128xi1> to vector<8x128xi32>
    %144 = arith.sitofp %143 : vector<8x128xi32> to vector<8x128xf32>
    %145 = arith.addf %138, %144 : vector<8x128xf32>
    %146 = arith.truncf %60 : vector<8x128xf32> to vector<8x128xbf16>
    %c0_4 = arith.constant 0 : index
    %c0_5 = arith.constant 0 : index
    %147 = vector.load %arg4[%c0_4, %c0_5] : memref<128x128xbf16, #tpu.memory_space<vmem>>, vector<128x128xbf16>
    %cst_6 = arith.constant dense<0.000000e+00> : vector<8x128xf32>
    %148 = tpu.matmul %146, %147, %cst_6 {dimension_numbers = #tpu.dot_dimension_numbers<[1], [0], [0], [1], [0, 0, 1, 1], [], []>} : vector<8x128xbf16>, vector<128x128xbf16>, vector<8x128xf32> -> vector<8x128xf32>
    %149 = arith.truncf %145 : vector<8x128xf32> to vector<8x128xbf16>
    %c0_7 = arith.constant 0 : index
    %c0_8 = arith.constant 0 : index
    %150 = vector.load %arg5[%c0_7, %c0_8] : memref<128x128xbf16, #tpu.memory_space<vmem>>, vector<128x128xbf16>
    %cst_9 = arith.constant dense<0.000000e+00> : vector<8x128xf32>
    %151 = tpu.matmul %149, %150, %cst_9 {dimension_numbers = #tpu.dot_dimension_numbers<[1], [0], [0], [1], [0, 0, 1, 1], [], []>} : vector<8x128xbf16>, vector<128x128xbf16>, vector<8x128xf32> -> vector<8x128xf32>
    %152 = arith.addf %148, %151 : vector<8x128xf32>
    %c0_10 = arith.constant 0 : index
    %c0_11 = arith.constant 0 : index
    %153 = vector.load %arg3[%c0_10, %c0_11] : memref<8x1xf32, #tpu.memory_space<vmem>>, vector<8x1xf32>
    %cst_12 = arith.constant 1.000000e+00 : f32
    %154 = vector.broadcast %cst_12 : f32 to vector<8x1xf32>
    %155 = arith.maximumf %153, %154 : vector<8x1xf32>
    %156 = tpu.reciprocal %155 {approx = true} : vector<8x1xf32> -> vector<8x1xf32>
    %157 = vector.broadcast %156 : vector<8x1xf32> to vector<8x128xf32>
    %158 = arith.mulf %152, %157 : vector<8x128xf32>
    %c0_13 = arith.constant 0 : index
    %c0_14 = arith.constant 0 : index
    %159 = vector.load %arg6[%c0_13, %c0_14] : memref<1x128xf32, #tpu.memory_space<vmem>>, vector<1x128xf32>
    %160 = vector.broadcast %159 : vector<1x128xf32> to vector<8x128xf32>
    %161 = arith.addf %158, %160 : vector<8x128xf32>
    %c0_15 = arith.constant 0 : index
    %c0_16 = arith.constant 0 : index
    %162 = vector.load %arg7[%c0_15, %c0_16] : memref<8x128xf32, #tpu.memory_space<vmem>>, vector<8x128xf32>
    tpu.vector_store %arg7[%c0_15, %c0_16], %161 {strides = array<i32>} : memref<8x128xf32, #tpu.memory_space<vmem>>, vector<8x128xf32>,
    return
  }
  func.func @transform_0(%arg0: i32) -> (i32, i32) {
    %c0_i32 = arith.constant 0 : i32
    %c0_i32_0 = arith.constant 0 : i32
    return %arg0, %c0_i32 : i32, i32
  }
  func.func @transform_1(%arg0: i32) -> (i32, i32) {
    %c0_i32 = arith.constant 0 : i32
    %c0_i32_0 = arith.constant 0 : i32
    return %arg0, %c0_i32 : i32, i32
  }
  func.func @transform_2(%arg0: i32) -> (i32, i32) {
    %c0_i32 = arith.constant 0 : i32
    %c0_i32_0 = arith.constant 0 : i32
    return %arg0, %c0_i32 : i32, i32
  }
  func.func @transform_3(%arg0: i32) -> (i32, i32) {
    %c0_i32 = arith.constant 0 : i32
    %c0_i32_0 = arith.constant 0 : i32
    %c0_i32_1 = arith.constant 0 : i32
    return %c0_i32, %c0_i32_0 : i32, i32
  }
  func.func @transform_4(%arg0: i32) -> (i32, i32) {
    %c0_i32 = arith.constant 0 : i32
    %c0_i32_0 = arith.constant 0 : i32
    %c0_i32_1 = arith.constant 0 : i32
    return %c0_i32, %c0_i32_0 : i32, i32
  }
  func.func @transform_5(%arg0: i32) -> (i32, i32) {
    %c0_i32 = arith.constant 0 : i32
    %c0_i32_0 = arith.constant 0 : i32
    %c0_i32_1 = arith.constant 0 : i32
    return %c0_i32, %c0_i32_0 : i32, i32
  }
  func.func @transform_6(%arg0: i32) -> (i32, i32) {
    %c0_i32 = arith.constant 0 : i32
    %c0_i32_0 = arith.constant 0 : i32
    return %arg0, %c0_i32 : i32, i32
  }
}

module attributes {stable_mosaic.version = 11 : i64} {
  func.func @fasttext_kernel(%arg0: i32, %arg1: memref<8x8xi32, #tpu.memory_space<vmem>>, %arg2: memref<8x12xi32, #tpu.memory_space<vmem>>, %arg3: memref<8x1xf32, #tpu.memory_space<vmem>>, %arg4: memref<128x128xbf16, #tpu.memory_space<vmem>>, %arg5: memref<128x128xbf16, #tpu.memory_space<vmem>>, %arg6: memref<1x128xf32, #tpu.memory_space<vmem>>, %arg7: memref<8x128xf32, #tpu.memory_space<vmem>>) attributes {dimension_semantics = [#tpu.dimension_semantics<parallel>], iteration_bounds = array<i64: 1>, scalar_prefetch = 0 : i64, scratch_operands = 0 : i64, tpu.core_type = #tpu.core_type<tc>, window_params = [{transform_indices = @transform_0, window_bounds = array<i64: 8, 8>}, {transform_indices = @transform_1, window_bounds = array<i64: 8, 12>}, {transform_indices = @transform_2, window_bounds = array<i64: 8, 1>}, {pipeline_mode = #tpu.pipeline_mode<synchronous>, transform_indices = @transform_3, window_bounds = array<i64: 128, 128>}, {pipeline_mode = #tpu.pipeline_mode<synchronous>, transform_indices = @transform_4, window_bounds = array<i64: 128, 128>}, {pipeline_mode = #tpu.pipeline_mode<synchronous>, transform_indices = @transform_5, window_bounds = array<i64: 1, 128>}, {transform_indices = @transform_6, window_bounds = array<i64: 8, 128>}]} {
    %c0 = arith.constant 0 : index
    %c0_0 = arith.constant 0 : index
    %0 = vector.load %arg1[%c0, %c0_0] : memref<8x8xi32, #tpu.memory_space<vmem>>, vector<8x8xi32>
    %c0_1 = arith.constant 0 : index
    %c0_2 = arith.constant 0 : index
    %1 = vector.load %arg2[%c0_1, %c0_2] : memref<8x12xi32, #tpu.memory_space<vmem>>, vector<8x12xi32>
    %2 = tpu.iota {dimensions = array<i32: 1>} : vector<1x128xi32>
    %3 = tpu.iota {dimensions = array<i32: 1>} : vector<1x128xi32>
    %cst = arith.constant 0.000000e+00 : f32
    %4 = vector.broadcast %cst : f32 to vector<8x128xf32>
    %5 = vector.extract_strided_slice %0 {offsets = [0, 0], sizes = [8, 1], strides = [1, 1]} : vector<8x8xi32> to vector<8x1xi32>
    %6 = vector.broadcast %5 : vector<8x1xi32> to vector<8x128xi32>
    %7 = vector.broadcast %2 : vector<1x128xi32> to vector<8x128xi32>
    %8 = arith.cmpi eq, %6, %7 : vector<8x128xi32>
    %9 = arith.extui %8 : vector<8x128xi1> to vector<8x128xi32>
    %10 = arith.sitofp %9 : vector<8x128xi32> to vector<8x128xf32>
    %11 = arith.addf %4, %10 : vector<8x128xf32>
    %12 = vector.extract_strided_slice %0 {offsets = [0, 1], sizes = [8, 1], strides = [1, 1]} : vector<8x8xi32> to vector<8x1xi32>
    %13 = vector.broadcast %12 : vector<8x1xi32> to vector<8x128xi32>
    %14 = vector.broadcast %2 : vector<1x128xi32> to vector<8x128xi32>
    %15 = arith.cmpi eq, %13, %14 : vector<8x128xi32>
    %16 = arith.extui %15 : vector<8x128xi1> to vector<8x128xi32>
    %17 = arith.sitofp %16 : vector<8x128xi32> to vector<8x128xf32>
    %18 = arith.addf %11, %17 : vector<8x128xf32>
    %19 = vector.extract_strided_slice %0 {offsets = [0, 2], sizes = [8, 1], strides = [1, 1]} : vector<8x8xi32> to vector<8x1xi32>
    %20 = vector.broadcast %19 : vector<8x1xi32> to vector<8x128xi32>
    %21 = vector.broadcast %2 : vector<1x128xi32> to vector<8x128xi32>
    %22 = arith.cmpi eq, %20, %21 : vector<8x128xi32>
    %23 = arith.extui %22 : vector<8x128xi1> to vector<8x128xi32>
    %24 = arith.sitofp %23 : vector<8x128xi32> to vector<8x128xf32>
    %25 = arith.addf %18, %24 : vector<8x128xf32>
    %26 = vector.extract_strided_slice %0 {offsets = [0, 3], sizes = [8, 1], strides = [1, 1]} : vector<8x8xi32> to vector<8x1xi32>
    %27 = vector.broadcast %26 : vector<8x1xi32> to vector<8x128xi32>
    %28 = vector.broadcast %2 : vector<1x128xi32> to vector<8x128xi32>
    %29 = arith.cmpi eq, %27, %28 : vector<8x128xi32>
    %30 = arith.extui %29 : vector<8x128xi1> to vector<8x128xi32>
    %31 = arith.sitofp %30 : vector<8x128xi32> to vector<8x128xf32>
    %32 = arith.addf %25, %31 : vector<8x128xf32>
    %33 = vector.extract_strided_slice %0 {offsets = [0, 4], sizes = [8, 1], strides = [1, 1]} : vector<8x8xi32> to vector<8x1xi32>
    %34 = vector.broadcast %33 : vector<8x1xi32> to vector<8x128xi32>
    %35 = vector.broadcast %2 : vector<1x128xi32> to vector<8x128xi32>
    %36 = arith.cmpi eq, %34, %35 : vector<8x128xi32>
    %37 = arith.extui %36 : vector<8x128xi1> to vector<8x128xi32>
    %38 = arith.sitofp %37 : vector<8x128xi32> to vector<8x128xf32>
    %39 = arith.addf %32, %38 : vector<8x128xf32>
    %40 = vector.extract_strided_slice %0 {offsets = [0, 5], sizes = [8, 1], strides = [1, 1]} : vector<8x8xi32> to vector<8x1xi32>
    %41 = vector.broadcast %40 : vector<8x1xi32> to vector<8x128xi32>
    %42 = vector.broadcast %2 : vector<1x128xi32> to vector<8x128xi32>
    %43 = arith.cmpi eq, %41, %42 : vector<8x128xi32>
    %44 = arith.extui %43 : vector<8x128xi1> to vector<8x128xi32>
    %45 = arith.sitofp %44 : vector<8x128xi32> to vector<8x128xf32>
    %46 = arith.addf %39, %45 : vector<8x128xf32>
    %47 = vector.extract_strided_slice %0 {offsets = [0, 6], sizes = [8, 1], strides = [1, 1]} : vector<8x8xi32> to vector<8x1xi32>
    %48 = vector.broadcast %47 : vector<8x1xi32> to vector<8x128xi32>
    %49 = vector.broadcast %2 : vector<1x128xi32> to vector<8x128xi32>
    %50 = arith.cmpi eq, %48, %49 : vector<8x128xi32>
    %51 = arith.extui %50 : vector<8x128xi1> to vector<8x128xi32>
    %52 = arith.sitofp %51 : vector<8x128xi32> to vector<8x128xf32>
    %53 = arith.addf %46, %52 : vector<8x128xf32>
    %54 = vector.extract_strided_slice %0 {offsets = [0, 7], sizes = [8, 1], strides = [1, 1]} : vector<8x8xi32> to vector<8x1xi32>
    %55 = vector.broadcast %54 : vector<8x1xi32> to vector<8x128xi32>
    %56 = vector.broadcast %2 : vector<1x128xi32> to vector<8x128xi32>
    %57 = arith.cmpi eq, %55, %56 : vector<8x128xi32>
    %58 = arith.extui %57 : vector<8x128xi1> to vector<8x128xi32>
    %59 = arith.sitofp %58 : vector<8x128xi32> to vector<8x128xf32>
    %60 = arith.addf %53, %59 : vector<8x128xf32>
    %cst_3 = arith.constant 0.000000e+00 : f32
    %61 = vector.broadcast %cst_3 : f32 to vector<8x128xf32>
    %62 = vector.extract_strided_slice %1 {offsets = [0, 0], sizes = [8, 1], strides = [1, 1]} : vector<8x12xi32> to vector<8x1xi32>
    %63 = vector.broadcast %62 : vector<8x1xi32> to vector<8x128xi32>
    %64 = vector.broadcast %3 : vector<1x128xi32> to vector<8x128xi32>
    %65 = arith.cmpi eq, %63, %64 : vector<8x128xi32>
    %66 = arith.extui %65 : vector<8x128xi1> to vector<8x128xi32>
    %67 = arith.sitofp %66 : vector<8x128xi32> to vector<8x128xf32>
    %68 = arith.addf %61, %67 : vector<8x128xf32>
    %69 = vector.extract_strided_slice %1 {offsets = [0, 1], sizes = [8, 1], strides = [1, 1]} : vector<8x12xi32> to vector<8x1xi32>
    %70 = vector.broadcast %69 : vector<8x1xi32> to vector<8x128xi32>
    %71 = vector.broadcast %3 : vector<1x128xi32> to vector<8x128xi32>
    %72 = arith.cmpi eq, %70, %71 : vector<8x128xi32>
    %73 = arith.extui %72 : vector<8x128xi1> to vector<8x128xi32>
    %74 = arith.sitofp %73 : vector<8x128xi32> to vector<8x128xf32>
    %75 = arith.addf %68, %74 : vector<8x128xf32>
    %76 = vector.extract_strided_slice %1 {offsets = [0, 2], sizes = [8, 1], strides = [1, 1]} : vector<8x12xi32> to vector<8x1xi32>
    %77 = vector.broadcast %76 : vector<8x1xi32> to vector<8x128xi32>
    %78 = vector.broadcast %3 : vector<1x128xi32> to vector<8x128xi32>
    %79 = arith.cmpi eq, %77, %78 : vector<8x128xi32>
    %80 = arith.extui %79 : vector<8x128xi1> to vector<8x128xi32>
    %81 = arith.sitofp %80 : vector<8x128xi32> to vector<8x128xf32>
    %82 = arith.addf %75, %81 : vector<8x128xf32>
    %83 = vector.extract_strided_slice %1 {offsets = [0, 3], sizes = [8, 1], strides = [1, 1]} : vector<8x12xi32> to vector<8x1xi32>
    %84 = vector.broadcast %83 : vector<8x1xi32> to vector<8x128xi32>
    %85 = vector.broadcast %3 : vector<1x128xi32> to vector<8x128xi32>
    %86 = arith.cmpi eq, %84, %85 : vector<8x128xi32>
    %87 = arith.extui %86 : vector<8x128xi1> to vector<8x128xi32>
    %88 = arith.sitofp %87 : vector<8x128xi32> to vector<8x128xf32>
    %89 = arith.addf %82, %88 : vector<8x128xf32>
    %90 = vector.extract_strided_slice %1 {offsets = [0, 4], sizes = [8, 1], strides = [1, 1]} : vector<8x12xi32> to vector<8x1xi32>
    %91 = vector.broadcast %90 : vector<8x1xi32> to vector<8x128xi32>
    %92 = vector.broadcast %3 : vector<1x128xi32> to vector<8x128xi32>
    %93 = arith.cmpi eq, %91, %92 : vector<8x128xi32>
    %94 = arith.extui %93 : vector<8x128xi1> to vector<8x128xi32>
    %95 = arith.sitofp %94 : vector<8x128xi32> to vector<8x128xf32>
    %96 = arith.addf %89, %95 : vector<8x128xf32>
    %97 = vector.extract_strided_slice %1 {offsets = [0, 5], sizes = [8, 1], strides = [1, 1]} : vector<8x12xi32> to vector<8x1xi32>
    %98 = vector.broadcast %97 : vector<8x1xi32> to vector<8x128xi32>
    %99 = vector.broadcast %3 : vector<1x128xi32> to vector<8x128xi32>
    %100 = arith.cmpi eq, %98, %99 : vector<8x128xi32>
    %101 = arith.extui %100 : vector<8x128xi1> to vector<8x128xi32>
    %102 = arith.sitofp %101 : vector<8x128xi32> to vector<8x128xf32>
    %103 = arith.addf %96, %102 : vector<8x128xf32>
    %104 = vector.extract_strided_slice %1 {offsets = [0, 6], sizes = [8, 1], strides = [1, 1]} : vector<8x12xi32> to vector<8x1xi32>
    %105 = vector.broadcast %104 : vector<8x1xi32> to vector<8x128xi32>
    %106 = vector.broadcast %3 : vector<1x128xi32> to vector<8x128xi32>
    %107 = arith.cmpi eq, %105, %106 : vector<8x128xi32>
    %108 = arith.extui %107 : vector<8x128xi1> to vector<8x128xi32>
    %109 = arith.sitofp %108 : vector<8x128xi32> to vector<8x128xf32>
    %110 = arith.addf %103, %109 : vector<8x128xf32>
    %111 = vector.extract_strided_slice %1 {offsets = [0, 7], sizes = [8, 1], strides = [1, 1]} : vector<8x12xi32> to vector<8x1xi32>
    %112 = vector.broadcast %111 : vector<8x1xi32> to vector<8x128xi32>
    %113 = vector.broadcast %3 : vector<1x128xi32> to vector<8x128xi32>
    %114 = arith.cmpi eq, %112, %113 : vector<8x128xi32>
    %115 = arith.extui %114 : vector<8x128xi1> to vector<8x128xi32>
    %116 = arith.sitofp %115 : vector<8x128xi32> to vector<8x128xf32>
    %117 = arith.addf %110, %116 : vector<8x128xf32>
    %118 = vector.extract_strided_slice %1 {offsets = [0, 8], sizes = [8, 1], strides = [1, 1]} : vector<8x12xi32> to vector<8x1xi32>
    %119 = vector.broadcast %118 : vector<8x1xi32> to vector<8x128xi32>
    %120 = vector.broadcast %3 : vector<1x128xi32> to vector<8x128xi32>
    %121 = arith.cmpi eq, %119, %120 : vector<8x128xi32>
    %122 = arith.extui %121 : vector<8x128xi1> to vector<8x128xi32>
    %123 = arith.sitofp %122 : vector<8x128xi32> to vector<8x128xf32>
    %124 = arith.addf %117, %123 : vector<8x128xf32>
    %125 = vector.extract_strided_slice %1 {offsets = [0, 9], sizes = [8, 1], strides = [1, 1]} : vector<8x12xi32> to vector<8x1xi32>
    %126 = vector.broadcast %125 : vector<8x1xi32> to vector<8x128xi32>
    %127 = vector.broadcast %3 : vector<1x128xi32> to vector<8x128xi32>
    %128 = arith.cmpi eq, %126, %127 : vector<8x128xi32>
    %129 = arith.extui %128 : vector<8x128xi1> to vector<8x128xi32>
    %130 = arith.sitofp %129 : vector<8x128xi32> to vector<8x128xf32>
    %131 = arith.addf %124, %130 : vector<8x128xf32>
    %132 = vector.extract_strided_slice %1 {offsets = [0, 10], sizes = [8, 1], strides = [1, 1]} : vector<8x12xi32> to vector<8x1xi32>
    %133 = vector.broadcast %132 : vector<8x1xi32> to vector<8x128xi32>
    %134 = vector.broadcast %3 : vector<1x128xi32> to vector<8x128xi32>
    %135 = arith.cmpi eq, %133, %134 : vector<8x128xi32>
    %136 = arith.extui %135 : vector<8x128xi1> to vector<8x128xi32>
    %137 = arith.sitofp %136 : vector<8x128xi32> to vector<8x128xf32>
    %138 = arith.addf %131, %137 : vector<8x128xf32>
    %139 = vector.extract_strided_slice %1 {offsets = [0, 11], sizes = [8, 1], strides = [1, 1]} : vector<8x12xi32> to vector<8x1xi32>
    %140 = vector.broadcast %139 : vector<8x1xi32> to vector<8x128xi32>
    %141 = vector.broadcast %3 : vector<1x128xi32> to vector<8x128xi32>
    %142 = arith.cmpi eq, %140, %141 : vector<8x128xi32>
    %143 = arith.extui %142 : vector<8x128xi1> to vector<8x128xi32>
    %144 = arith.sitofp %143 : vector<8x128xi32> to vector<8x128xf32>
    %145 = arith.addf %138, %144 : vector<8x128xf32>
    %146 = arith.truncf %60 : vector<8x128xf32> to vector<8x128xbf16>
    %c0_4 = arith.constant 0 : index
    %c0_5 = arith.constant 0 : index
    %147 = vector.load %arg4[%c0_4, %c0_5] : memref<128x128xbf16, #tpu.memory_space<vmem>>, vector<128x128xbf16>
    %cst_6 = arith.constant dense<0.000000e+00> : vector<8x128xf32>
    %148 = tpu.matmul %146, %147, %cst_6 {dimension_numbers = #tpu.dot_dimension_numbers<[1], [0], [0], [1], [0, 0, 1, 1], [], []>} : vector<8x128xbf16>, vector<128x128xbf16>, vector<8x128xf32> -> vector<8x128xf32>
    %149 = arith.truncf %145 : vector<8x128xf32> to vector<8x128xbf16>
    %c0_7 = arith.constant 0 : index
    %c0_8 = arith.constant 0 : index
    %150 = vector.load %arg5[%c0_7, %c0_8] : memref<128x128xbf16, #tpu.memory_space<vmem>>, vector<128x128xbf16>
    %cst_9 = arith.constant dense<0.000000e+00> : vector<8x128xf32>
    %151 = tpu.matmul %149, %150, %cst_9 {dimension_numbers = #tpu.dot_dimension_numbers<[1], [0], [0], [1], [0, 0, 1, 1], [], []>} : vector<8x128xbf16>, vector<128x128xbf16>, vector<8x128xf32> -> vector<8x128xf32>
    %152 = arith.addf %148, %151 : vector<8x128xf32>
    %c0_10 = arith.constant 0 : index
    %c0_11 = arith.constant 0 : index
    %153 = vector.load %arg3[%c0_10, %c0_11] : memref<8x1xf32, #tpu.memory_space<vmem>>, vector<8x1xf32>
    %cst_12 = arith.constant 1.000000e+00 : f32
    %154 = vector.broadcast %cst_12 : f32 to vector<8x1xf32>
    %155 = arith.maximumf %153, %154 : vector<8x1xf32>
    %156 = tpu.reciprocal %155 {approx = true} : vector<8x1xf32> -> vector<8x1xf32>
    %157 = vector.broadcast %156 : vector<8x1xf32> to vector<8x128xf32>
    %158 = arith.mulf %152, %157 : vector<8x128xf32>
    %c0_13 = arith.constant 0 : index
    %c0_14 = arith.constant 0 : index
    %159 = vector.load %arg6[%c0_13, %c0_14] : memref<1x128xf32, #tpu.memory_space<vmem>>, vector<1x128xf32>
    %160 = vector.broadcast %159 : vector<1x128xf32> to vector<8x128xf32>
    %161 = arith.addf %158, %160 : vector<8x128xf32>
    %c0_15 = arith.constant 0 : index
    %c0_16 = arith.constant 0 : index
    %162 = vector.load %arg7[%c0_15, %c0_16] : memref<8x128xf32, #tpu.memory_space<vmem>>, vector<8x128xf32>
    tpu.vector_store %arg7[%c0_15, %c0_16], %161 {strides = array<i32>} : memref<8x128xf32, #tpu.memory_space<vmem>>, vector<8x128xf32>,
    return
  }
  func.func @transform_0(%arg0: i32) -> (i32, i32) {
    %c0_i32 = arith.constant 0 : i32
    %c0_i32_0 = arith.constant 0 : i32
    return %arg0, %c0_i32 : i32, i32
  }
  func.func @transform_1(%arg0: i32) -> (i32, i32) {
    %c0_i32 = arith.constant 0 : i32
    %c0_i32_0 = arith.constant 0 : i32
    return %arg0, %c0_i32 : i32, i32
  }
  func.func @transform_2(%arg0: i32) -> (i32, i32) {
    %c0_i32 = arith.constant 0 : i32
    %c0_i32_0 = arith.constant 0 : i32
    return %arg0, %c0_i32 : i32, i32
  }
  func.func @transform_3(%arg0: i32) -> (i32, i32) {
    %c0_i32 = arith.constant 0 : i32
    %c0_i32_0 = arith.constant 0 : i32
    %c0_i32_1 = arith.constant 0 : i32
    return %c0_i32, %c0_i32_0 : i32, i32
  }
  func.func @transform_4(%arg0: i32) -> (i32, i32) {
    %c0_i32 = arith.constant 0 : i32
    %c0_i32_0 = arith.constant 0 : i32
    %c0_i32_1 = arith.constant 0 : i32
    return %c0_i32, %c0_i32_0 : i32, i32
  }
  func.func @transform_5(%arg0: i32) -> (i32, i32) {
    %c0_i32 = arith.constant 0 : i32
    %c0_i32_0 = arith.constant 0 : i32
    %c0_i32_1 = arith.constant 0 : i32
    return %c0_i32, %c0_i32_0 : i32, i32
  }
  func.func @transform_6(%arg0: i32) -> (i32, i32) {
    %c0_i32 = arith.constant 0 : i32
    %c0_i32_0 = arith.constant 0 : i32
    return %arg0, %c0_i32 : i32, i32
  }
}

</mosaic_0001>

<bundles_post_ra>
// kernel: tpu_custom_call.1
= control target key start
LH: loop header
LB: loop body
LE: loop exit
PB: predicated region body
PF: predicated region fallthrough
CT: control target
= control target key end

     0   :  { %11 = vsyncpa [#allocation3], 0  ;;  %s903_s0 = inlined_call_operand.vmem [shape: s32[8,8], index: 0, kind: input, shape index: {}]   ;;  %s904_s1 = inlined_call_operand.hbm [shape: s32[8,12], index: 1, kind: input, shape index: {}]   ;;  %s905_s2 = inlined_call_operand.vmem [shape: f32[8,1], index: 2, kind: input, shape index: {}]   ;;  %s906_s3 = inlined_call_operand.hbm [shape: bf16[128,128], index: 3, kind: input, shape index: {}]   ;;  %s907_s4 = inlined_call_operand.hbm [shape: bf16[128,128], index: 4, kind: input, shape index: {}]   ;;  %s908_s5 = inlined_call_operand.vmem [shape: f32[1,128], index: 5, kind: input, shape index: {}]   ;;  %s909_s6 = inlined_call_operand.hbm [shape: f32[8,128], index: 6, kind: output, shape index: {}]  }
   0x1   :  { %12 = vsyncpa [#allocation6], 0 }
   0x2   :  { %13 = vsyncpa [#allocation4], 0  ;;  %s701_s21 = smov [#allocation5]   ;;  %s607_s25 = scalar_lea.hbm %s906_s3, 1024 }
   0x3   :  { %s33_s22 = sshll.u32 %s701_s21, 4  ;;  %p608_p0 = scmp.ne.s32.totalorder %s906_s3, %s607_s25  ;;  %s34_s22 = int_to_ptr.vmem [resolvable:$true] %s33_s22 }
   0x4   :  { %p611_p1 = scmp.lt.u32.totalorder %s607_s25, %s906_s3 }
   0x6   :  { %p613_p2 = pnand %p611_p1, %p608_p0 }
   0x8   :  { %616 = shalt.err (!%p613_p2)
}
   0x9   :  { %s617_s30 = scalar_lea.vmem %s34_s22, 1024  ;;  %p622_p4 = scmp.lt.s32.totalorder %s34_s22, %s34_s22 }
   0xa   :  { %p618_p3 = scmp.ne.s32.totalorder %s34_s22, %s617_s30  ;;  %p623_p5 = scmp.lt.s32.totalorder %s617_s30, %s617_s30 }
   0xc   :  { %p624_p6 = por %p623_p5, %p622_p4 }
   0xe   :  { %p625_p7 = pnand %p624_p6, %p618_p3 }
  0x10   :  { %628 = shalt.err (!%p625_p7)
}
  0x11   :  { %s702_s7 = smov 64   ;;  %s703_s8 = smov 4  }
  0x12   :  { %39 = dma.hbm_to_vmem [thread:$0]  %s906_s3, 1024, %s34_s22, [#allocation6], %s702_s7, %s702_s7, %s703_s8  }
  0x13   :  { %s704_s11 = smov [#allocation2]   ;;  %s705_s13 = smov [#allocation7]  }
  0x14   :  { %s22_s12 = sshll.u32 %s704_s11, 4  ;;  %s45_s14 = sshll.u32 %s705_s13, 4  ;;  %s23_s12 = int_to_ptr.vmem [resolvable:$true] %s22_s12  ;;  %s46_s14 = int_to_ptr.vmem [resolvable:$true] %s45_s14 }
  0x15   :  { %s629_s17 = scalar_lea.hbm %s904_s1, 128 }
  0x16   :  { %p630_p8 = scmp.ne.s32.totalorder %s904_s1, %s629_s17  ;;  %p633_p9 = scmp.lt.u32.totalorder %s629_s17, %s904_s1 }
  0x18   :  { %p635_p10 = pnand %p633_p9, %p630_p8 }
  0x1a   :  { %638 = shalt.err (!%p635_p10)
}
  0x1b   :  { %s639_s3 = scalar_lea.vmem %s23_s12, 128  ;;  %p644_p12 = scmp.lt.s32.totalorder %s23_s12, %s23_s12 }
  0x1c   :  { %p640_p11 = scmp.ne.s32.totalorder %s23_s12, %s639_s3  ;;  %p645_p13 = scmp.lt.s32.totalorder %s639_s3, %s639_s3 }
  0x1e   :  { %p646_p0 = por %p645_p13, %p644_p12 }
  0x20   :  { %p647_p1 = pnand %p646_p0, %p640_p11 }
  0x22   :  { %650 = shalt.err (!%p647_p1)
}
  0x23   :  { %25 = dma.hbm_to_vmem [thread:$0]  %s904_s1, 128, %s23_s12, [#allocation3]  }
  0x24   :  { %s651_s26 = scalar_lea.hbm %s907_s4, 1024 }
  0x25   :  { %p652_p2 = scmp.ne.s32.totalorder %s907_s4, %s651_s26  ;;  %p655_p3 = scmp.lt.u32.totalorder %s651_s26, %s907_s4 }
  0x27   :  { %p657_p4 = pnand %p655_p3, %p652_p2 }
  0x29   :  { %660 = shalt.err (!%p657_p4)
}
  0x2a   :  { %s661_s9 = scalar_lea.vmem %s46_s14, 1024  ;;  %p666_p6 = scmp.lt.s32.totalorder %s46_s14, %s46_s14 }
  0x2b   :  { %p662_p5 = scmp.ne.s32.totalorder %s46_s14, %s661_s9  ;;  %p667_p7 = scmp.lt.s32.totalorder %s661_s9, %s661_s9 }
  0x2d   :  { %p668_p8 = por %p667_p7, %p666_p6 }
  0x2f   :  { %p669_p9 = pnand %p668_p8, %p662_p5 }
  0x31   :  { %672 = shalt.err (!%p669_p9)
}
  0x32   :  { %51 = dma.hbm_to_vmem [thread:$0]  %s907_s4, 1024, %s46_s14, [#allocation6], %s702_s7, %s702_s7, %s703_s8  }
  0x33   :  { %695 = dma.done.wait [#allocation3], 128  }
  0x34   :  { %696 = vsyncadd [#allocation3], 4294967168 }
  0x35   :  { %697 = dma.done.wait [#allocation6], 2048  }
  0x36   :  { %698 = vsyncadd [#allocation6], 4294965248  ;;  %v706_v0 = vmov 2   ;;  %v707_v1 = vmov 0   ;;  %v708_v2 = vmov 0.0   ;;  %v800_v3 = vld [vmem:[#allocation2] sm:$0xff]  ;;  %v66_v40 = vlaneseq }
  0x37   :  { %570 = vset.pattern.permute.xlu1 %v706_v0  ;;  %568 = vset.pattern.permute.xlu0 %v707_v1  ;;  %v709_v4 = vmov 3   ;;  %v710_v5 = vmov 1   ;;  %v809_v6 = vld [vmem:[%s903_s0] sm:$0xff]  ;;  %v711_v7 = vmov 4   ;;  %v712_v8 = vmov 5   ;;  %v589_v11 = vld [vmem:[#allocation5] sm:$0xff]  }
  0x38   :  { %527 = vmatprep.subr.bf16.mxu0 %v708_v2  ;;  %507 = vmatprep.subr.bf16.mxu1 %v708_v2  ;;  %v713_v9 = vmov 7   ;;  %v714_v10 = vmov 6   ;;  %v715_v12 = vmov 10   ;;  %v590_v13 = vld [vmem:[#allocation5 + $0x8] sm:$0xff]   ;;  %v591_v14 = vld [vmem:[#allocation7] sm:$0xff]   ;;  %v592_v15 = vld [vmem:[#allocation5 + $0x10] sm:$0xff]  }
  0x39   :  { %139 = vperm.xlu1 %570, %v800_v3   ;;  %125 = vperm.xlu0 %568, %v800_v3   ;;  %v593_v16 = vld [vmem:[#allocation7 + $0x8] sm:$0xff]   ;;  %v716_v17 = vmov 8   ;;  %v594_v18 = vld [vmem:[#allocation5 + $0x18] sm:$0xff]   ;;  %v595_v19 = vld [vmem:[#allocation7 + $0x10] sm:$0xff]   ;;  %v717_v20 = vmov 9   ;;  %v718_v29 = vmov 11  }
  0x3a   :  { %528 = vmatpush3.bf16.msra.mxu0 %v589_v11  ;;  %508 = vmatpush3.bf16.msra.mxu1 %v591_v14  ;;  %v596_v21 = vld [vmem:[#allocation5 + $0x20] sm:$0xff]   ;;  %v597_v22 = vld [vmem:[#allocation7 + $0x18] sm:$0xff]   ;;  %v598_v23 = vld [vmem:[#allocation5 + $0x28] sm:$0xff]   ;;  %vm719_vm0 = vmmov 0   ;;  %v846_v42 = vand.u32 127, %v66_v40  ;;  %s720_s12 = smov [#allocation8]  }
  0x3b   :  { %529 = vmatprep.subr.bf16.mxu0 %v708_v2  ;;  %509 = vmatprep.subr.bf16.mxu1 %v708_v2  ;;  %v599_v24 = vld [vmem:[#allocation7 + $0x20] sm:$0xff]   ;;  %v600_v25 = vld [vmem:[#allocation5 + $0x30] sm:$0xff]   ;;  %v601_v26 = vld [vmem:[#allocation7 + $0x28] sm:$0xff]   ;;  %s442_s13 = sshll.u32 %s720_s12, 4  ;;  %s443_s13 = int_to_ptr.vmem [resolvable:$true] %s442_s13 }
  0x3c   :  { %v602_v27 = vld [vmem:[#allocation5 + $0x38] sm:$0xff]   ;;  %v603_v28 = vld [vmem:[#allocation7 + $0x30] sm:$0xff]   ;;  %543 = vmatprep.mubr.msk.bf16.mxu0 %vm719_vm0, %v708_v2  ;;  %523 = vmatprep.mubr.msk.bf16.mxu1 %vm719_vm0, %v708_v2  ;;  %s673_s14 = scalar_lea.vmem %s443_s13, 128  ;;  %p678_p11 = scmp.lt.s32.totalorder %s443_s13, %s443_s13 }
  0x3d   :  { %571 = vset.pattern.permute.xlu1 %v709_v4  ;;  %569 = vset.pattern.permute.xlu0 %v710_v5  ;;  %v604_v30 = vld [vmem:[#allocation7 + $0x38] sm:$0xff]   ;;  %p674_p10 = scmp.ne.s32.totalorder %s443_s13, %s673_s14  ;;  %p679_p12 = scmp.lt.s32.totalorder %s673_s14, %s673_s14 }
  0x3e   :  { %146 = vperm.xlu1 %571, %v800_v3   ;;  %132 = vperm.xlu0 %569, %v800_v3   ;;  %v418_v31 = vld [vmem:[%s905_s2] sm:$0xff] }
  0x3f   :  { %530 = vmatpush3.bf16.msra.mxu0 %v590_v13  ;;  %510 = vmatpush3.bf16.msra.mxu1 %v593_v16  ;;  %v419_v32 = vmax.f32 %v418_v31, 1.0  ;;  %p680_p13 = por %p679_p12, %p678_p11 }
  0x40   :  { %531 = vmatprep.subr.bf16.mxu0 %v708_v2  ;;  %511 = vmatprep.subr.bf16.mxu1 %v708_v2 }
  0x41   :  { %605 = vrcp.f32 %v419_v32  ;;  %p681_p0 = pnand %p680_p13, %p674_p10 }
  0x42   :  { %572 = vset.pattern.permute.xlu1 %v711_v7  ;;  %573 = vset.pattern.permute.xlu0 %v707_v1 }
  0x43   :  { %153 = vperm.xlu1 %572, %v800_v3   ;;  %69 = vperm.xlu0 %573, %v809_v6  }
  0x44   :  { %532 = vmatpush3.bf16.msra.mxu0 %v592_v15  ;;  %512 = vmatpush3.bf16.msra.mxu1 %v595_v19 }
  0x45   :  { %533 = vmatprep.subr.bf16.mxu0 %v708_v2  ;;  %513 = vmatprep.subr.bf16.mxu1 %v708_v2 }
  0x47   :  { %574 = vset.pattern.permute.xlu1 %v710_v5  ;;  %576 = vset.pattern.permute.xlu0 %v706_v0 }
  0x48   :  { %76 = vperm.xlu1 %574, %v809_v6   ;;  %83 = vperm.xlu0 %576, %v809_v6  }
  0x49   :  { %534 = vmatpush3.bf16.msra.mxu0 %v594_v18  ;;  %514 = vmatpush3.bf16.msra.mxu1 %v597_v22 }
  0x4a   :  { %535 = vmatprep.subr.bf16.mxu0 %v708_v2  ;;  %515 = vmatprep.subr.bf16.mxu1 %v708_v2 }
  0x4b   :  { %v606_v33 = vpop.eup %605 }
  0x4c   :  { %575 = vset.pattern.permute.xlu1 %v712_v8  ;;  %579 = vset.pattern.permute.xlu0 %v713_v9 }
  0x4d   :  { %160 = vperm.xlu1 %575, %v800_v3   ;;  %174 = vperm.xlu0 %579, %v800_v3  }
  0x4e   :  { %536 = vmatpush3.bf16.msra.mxu0 %v596_v21  ;;  %516 = vmatpush3.bf16.msra.mxu1 %v599_v24 }
  0x4f   :  { %537 = vmatprep.subr.bf16.mxu0 %v708_v2  ;;  %517 = vmatprep.subr.bf16.mxu1 %v708_v2 }
  0x51   :  { %577 = vset.pattern.permute.xlu1 %v714_v10  ;;  %582 = vset.pattern.permute.xlu0 %v712_v8 }
  0x52   :  { %167 = vperm.xlu1 %577, %v800_v3   ;;  %104 = vperm.xlu0 %582, %v809_v6  }
  0x53   :  { %538 = vmatpush3.bf16.msra.mxu0 %v598_v23  ;;  %518 = vmatpush3.bf16.msra.mxu1 %v601_v26 }
  0x54   :  { %539 = vmatprep.subr.bf16.mxu0 %v708_v2  ;;  %519 = vmatprep.subr.bf16.mxu1 %v708_v2 }
  0x56   :  { %578 = vset.pattern.permute.xlu1 %v709_v4  ;;  %585 = vset.pattern.permute.xlu0 %v715_v12 }
  0x57   :  { %90 = vperm.xlu1 %578, %v809_v6   ;;  %195 = vperm.xlu0 %585, %v800_v3  }
  0x58   :  { %540 = vmatpush3.bf16.msra.mxu0 %v600_v25  ;;  %520 = vmatpush3.bf16.msra.mxu1 %v603_v28 }
  0x59   :  { %541 = vmatprep.subr.bf16.mxu0 %v708_v2  ;;  %521 = vmatprep.subr.bf16.mxu1 %v708_v2 }
  0x5b   :  { %580 = vset.pattern.permute.xlu1 %v711_v7  ;;  %588 = vset.pattern.permute.xlu0 %v707_v1 }
  0x5c   :  { %97 = vperm.xlu1 %580, %v809_v6   ;;  %542 = vmatpush3.bf16.msra.mxu0 %v602_v27 }
  0x5d   :  { %522 = vmatpush3.bf16.msra.mxu1 %v604_v30  ;;  %423 = vperm.xlu0 %588, %v606_v33  }
  0x60   :  { %581 = vset.pattern.permute.xlu1 %v716_v17 }
  0x61   :  { %181 = vperm.xlu1 %581, %v800_v3  }
  0x65   :  { %583 = vset.pattern.permute.xlu1 %v717_v20 }
  0x66   :  { %188 = vperm.xlu1 %583, %v800_v3  }
  0x6a   :  { %584 = vset.pattern.permute.xlu1 %v714_v10 }
  0x6b   :  { %111 = vperm.xlu1 %584, %v809_v6  }
  0x6f   :  { %586 = vset.pattern.permute.xlu1 %v713_v9 }
  0x70   :  { %118 = vperm.xlu1 %586, %v809_v6  }
  0x74   :  { %587 = vset.pattern.permute.xlu1 %v718_v29 }
  0x75   :  { %202 = vperm.xlu1 %587, %v800_v3  }
  0xb8   :  { %v140_v34 = vpop.permute.xlu1 %139  ;;  %v126_v38 = vpop.permute.xlu0 %125 }
  0xb9   :  { %vm127_vm1 = vcmp.eq.s32.totalorder %v126_v38, %v846_v42  ;;  %vm141_vm3 = vcmp.eq.s32.totalorder %v140_v34, %v846_v42 }
  0xba   :  { %v460_v44 = vsel %vm127_vm1, 1.0, %v708_v2  ;;  %v462_v50 = vsel %vm141_vm3, 1.0, %v708_v2 }
  0xbd   :  { %v147_v35 = vpop.permute.xlu1 %146  ;;  %v133_v41 = vpop.permute.xlu0 %132 }
  0xbe   :  { %vm134_vm2 = vcmp.eq.s32.totalorder %v133_v41, %v846_v42  ;;  %vm148_vm6 = vcmp.eq.s32.totalorder %v147_v35, %v846_v42 }
  0xbf   :  { %v461_v45 = vsel %vm134_vm2, 1.0, %v708_v2  ;;  %v463_v55 = vsel %vm148_vm6, 1.0, %v708_v2 }
  0xc0   :  { %v137_v48 = vadd.f32 %v461_v45, %v460_v44 }
  0xc2   :  { %v154_v36 = vpop.permute.xlu1 %153  ;;  %v70_v47 = vpop.permute.xlu0 %69  ;;  %v144_v51 = vadd.f32 %v462_v50, %v137_v48 }
  0xc3   :  { %vm71_vm4 = vcmp.eq.s32.totalorder %v70_v47, %v846_v42  ;;  %vm155_vm7 = vcmp.eq.s32.totalorder %v154_v36, %v846_v42 }
  0xc4   :  { %v452_v53 = vsel %vm71_vm4, 1.0, %v708_v2  ;;  %v151_v57 = vadd.f32 %v463_v55, %v144_v51  ;;  %v464_v59 = vsel %vm155_vm7, 1.0, %v708_v2 }
  0xc6   :  { %v158_v63 = vadd.f32 %v464_v59, %v151_v57 }
  0xc7   :  { %v77_v37 = vpop.permute.xlu1 %76  ;;  %v84_v52 = vpop.permute.xlu0 %83 }
  0xc8   :  { %vm78_vm5 = vcmp.eq.s32.totalorder %v77_v37, %v846_v42  ;;  %vm85_vm8 = vcmp.eq.s32.totalorder %v84_v52, %v846_v42 }
  0xc9   :  { %v453_v54 = vsel %vm78_vm5, 1.0, %v708_v2  ;;  %v454_v61 = vsel %vm85_vm8, 1.0, %v708_v2 }
  0xca   :  { %v81_v60 = vadd.f32 %v453_v54, %v452_v53 }
  0xcc   :  { %v161_v39 = vpop.permute.xlu1 %160  ;;  %v175_v58 = vpop.permute.xlu0 %174  ;;  %v88_v4 = vadd.f32 %v454_v61, %v81_v60 }
  0xcd   :  { %vm162_vm9 = vcmp.eq.s32.totalorder %v161_v39, %v846_v42  ;;  %vm176_vm13 = vcmp.eq.s32.totalorder %v175_v58, %v846_v42 }
  0xce   :  { %v465_v62 = vsel %vm162_vm9, 1.0, %v708_v2  ;;  %v467_v10 = vsel %vm176_vm13, 1.0, %v708_v2 }
  0xcf   :  { %v165_v6 = vadd.f32 %v465_v62, %v158_v63 }
  0xd1   :  { %v168_v43 = vpop.permute.xlu1 %167  ;;  %v105_v1 = vpop.permute.xlu0 %104 }
  0xd2   :  { %vm169_vm11 = vcmp.eq.s32.totalorder %v168_v43, %v846_v42  ;;  %vm106_vm14 = vcmp.eq.s32.totalorder %v105_v1, %v846_v42  ;;  %v488_v43 = vld [vmem:[%s908_s5] ss:$0 sm:$0xff] }
  0xd3   :  { %v466_v5 = vsel %vm169_vm11, 1.0, %v708_v2  ;;  %v457_v13 = vsel %vm106_vm14, 1.0, %v708_v2 }
  0xd4   :  { %v172_v9 = vadd.f32 %v466_v5, %v165_v6 }
  0xd6   :  { %v91_v46 = vpop.permute.xlu1 %90  ;;  %v196_v15 = vpop.permute.xlu0 %195  ;;  %v179_v16 = vadd.f32 %v467_v10, %v172_v9 }
  0xd7   :  { %vm92_vm10 = vcmp.eq.s32.totalorder %v91_v46, %v846_v42  ;;  %vm197_vm2 = vcmp.eq.s32.totalorder %v196_v15, %v846_v42 }
  0xd8   :  { %v455_v0 = vsel %vm92_vm10, 1.0, %v708_v2  ;;  %v470_v25 = vsel %vm197_vm2, 1.0, %v708_v2 }
  0xd9   :  { %v95_v8 = vadd.f32 %v455_v0, %v88_v4 }
  0xdb   :  { %v98_v49 = vpop.permute.xlu1 %97 }
  0xdc   :  { %vm99_vm12 = vcmp.eq.s32.totalorder %v98_v49, %v846_v42  ;;  %v424_v38 = vpop.permute.xlu0 %423 }
  0xdd   :  { %v456_v7 = vsel %vm99_vm12, 1.0, %v708_v2 }
  0xde   :  { %v102_v11 = vadd.f32 %v456_v7, %v95_v8 }
  0xe0   :  { %v182_v56 = vpop.permute.xlu1 %181  ;;  %v109_v18 = vadd.f32 %v457_v13, %v102_v11 }
  0xe1   :  { %vm183_vm15 = vcmp.eq.s32.totalorder %v182_v56, %v846_v42 }
  0xe2   :  { %v468_v14 = vsel %vm183_vm15, 1.0, %v708_v2 }
  0xe3   :  { %v186_v20 = vadd.f32 %v468_v14, %v179_v16 }
  0xe5   :  { %v189_v3 = vpop.permute.xlu1 %188 }
  0xe6   :  { %vm190_vm0 = vcmp.eq.s32.totalorder %v189_v3, %v846_v42 }
  0xe7   :  { %v469_v19 = vsel %vm190_vm0, 1.0, %v708_v2 }
  0xe8   :  { %v193_v23 = vadd.f32 %v469_v19, %v186_v20 }
  0xea   :  { %v112_v12 = vpop.permute.xlu1 %111  ;;  %v200_v29 = vadd.f32 %v470_v25, %v193_v23 }
  0xeb   :  { %vm113_vm1 = vcmp.eq.s32.totalorder %v112_v12, %v846_v42 }
  0xec   :  { %v458_v17 = vsel %vm113_vm1, 1.0, %v708_v2 }
  0xed   :  { %v116_v22 = vadd.f32 %v458_v17, %v109_v18 }
  0xef   :  { %v119_v21 = vpop.permute.xlu1 %118 }
  0xf0   :  { %vm120_vm3 = vcmp.eq.s32.totalorder %v119_v21, %v846_v42 }
  0xf1   :  { %v459_v24 = vsel %vm120_vm3, 1.0, %v708_v2 }
  0xf2   :  { %v123_v26 = vadd.f32 %v459_v24, %v116_v22 }
  0xf4   :  { %v208_v27 = vpack.c.bf16 %v123_v26, %v123_v26  ;;  %v203_v28 = vpop.permute.xlu1 %202 }
  0xf5   :  { %vm204_vm4 = vcmp.eq.s32.totalorder %v203_v28, %v846_v42 }
  0xf6   :  { %v471_v30 = vsel %vm204_vm4, 1.0, %v708_v2  ;;  %544 = vmatmul.mubr.bf16.vlgmr.msra.gmra.mrb[0].mxu0 %v208_v27 }
  0xf7   :  { %v207_v31 = vadd.f32 %v471_v30, %v200_v29 }
  0xf9   :  { %v225_v32 = vpack.c.bf16 %v207_v31, %v207_v31 }
  0xfb   :  { %524 = vmatmul.mubr.bf16.vlgmr.msra.gmra.mrb[0].mxu1 %v225_v32 }
 0x1c9   :  { %v412_v33 = vpop.f32.mrb[0].mxu0 }
 0x1ca   :  { %v545_v34 = vpop.f32.mrb[1].mxu0 }
 0x1cb   :  { %v415_v35 = vpop.f32.mrb[2].mxu0 }
 0x1cc   :  { %v546_v36 = vpop.f32.mrb[3].mxu0 }
 0x1ce   :  { %v324_v37 = vpop.f32.mrb[0].mxu1 }
 0x1cf   :  { %v413_v39 = vadd.f32 %v412_v33, %v324_v37  ;;  %v525_v40 = vpop.f32.mrb[1].mxu1 }
 0x1d0   :  { %v327_v41 = vpop.f32.mrb[2].mxu1 }
 0x1d1   :  { %v426_v2 = vmul.f32 %v424_v38, %v413_v39  ;;  %v526_v42 = vpop.f32.mrb[3].mxu1 }
 0x1d3   :  { %v434_v44 = vadd.f32 %v488_v43, %v426_v2 }
 0x1d5   :  { %435 = vst [vmem:[#allocation8] sm:$0xff] %v434_v44 }
 0x1d6   :  { %684 = shalt.err (!%p681_p0)
}
 0x1d7   :  { %s685_s17 = scalar_lea.hbm %s909_s6, 128 }
 0x1d8   :  { %p686_p1 = scmp.ne.s32.totalorder %s909_s6, %s685_s17  ;;  %p689_p2 = scmp.lt.u32.totalorder %s685_s17, %s909_s6 }
 0x1da   :  { %p691_p3 = pnand %p689_p2, %p686_p1 }
 0x1dc   :  { %694 = shalt.err (!%p691_p3)
}
 0x1dd   :  { %445 = dma.vmem_to_hbm [thread:$0]  %s443_s13, 128, %s909_s6, [#allocation4]  }
 0x1de   :  { %699 = dma.done.wait [#allocation4], 128  }
 0x1df   :  { %700 = vsyncadd [#allocation4], 4294967168 }
 0x1e0   :  { %449 = vsyncpa [#allocation3], 1 }
 0x1e1   :  { %450 = vsyncpa [#allocation6], 1 }
 0x1e2   :  { %451 = vsyncpa [#allocation4], 1 }

// kernel: tpu_custom_call.1
= control target key start
LH: loop header
LB: loop body
LE: loop exit
PB: predicated region body
PF: predicated region fallthrough
CT: control target
= control target key end

     0   :  { %11 = vsyncpa [#allocation3], 0  ;;  %s903_s0 = inlined_call_operand.vmem [shape: s32[8,8], index: 0, kind: input, shape index: {}]   ;;  %s904_s1 = inlined_call_operand.hbm [shape: s32[8,12], index: 1, kind: input, shape index: {}]   ;;  %s905_s2 = inlined_call_operand.vmem [shape: f32[8,1], index: 2, kind: input, shape index: {}]   ;;  %s906_s3 = inlined_call_operand.hbm [shape: bf16[128,128], index: 3, kind: input, shape index: {}]   ;;  %s907_s4 = inlined_call_operand.hbm [shape: bf16[128,128], index: 4, kind: input, shape index: {}]   ;;  %s908_s5 = inlined_call_operand.vmem [shape: f32[1,128], index: 5, kind: input, shape index: {}]   ;;  %s909_s6 = inlined_call_operand.hbm [shape: f32[8,128], index: 6, kind: output, shape index: {}]  }
   0x1   :  { %12 = vsyncpa [#allocation6], 0 }
   0x2   :  { %13 = vsyncpa [#allocation4], 0  ;;  %s701_s21 = smov [#allocation5]   ;;  %s607_s25 = scalar_lea.hbm %s906_s3, 1024 }
   0x3   :  { %s33_s22 = sshll.u32 %s701_s21, 4  ;;  %p608_p0 = scmp.ne.s32.totalorder %s906_s3, %s607_s25  ;;  %s34_s22 = int_to_ptr.vmem [resolvable:$true] %s33_s22 }
   0x4   :  { %p611_p1 = scmp.lt.u32.totalorder %s607_s25, %s906_s3 }
   0x6   :  { %p613_p2 = pnand %p611_p1, %p608_p0 }
   0x8   :  { %616 = shalt.err (!%p613_p2)
}
   0x9   :  { %s617_s30 = scalar_lea.vmem %s34_s22, 1024  ;;  %p622_p4 = scmp.lt.s32.totalorder %s34_s22, %s34_s22 }
   0xa   :  { %p618_p3 = scmp.ne.s32.totalorder %s34_s22, %s617_s30  ;;  %p623_p5 = scmp.lt.s32.totalorder %s617_s30, %s617_s30 }
   0xc   :  { %p624_p6 = por %p623_p5, %p622_p4 }
   0xe   :  { %p625_p7 = pnand %p624_p6, %p618_p3 }
  0x10   :  { %628 = shalt.err (!%p625_p7)
}
  0x11   :  { %s702_s7 = smov 64   ;;  %s703_s8 = smov 4  }
  0x12   :  { %39 = dma.hbm_to_vmem [thread:$0]  %s906_s3, 1024, %s34_s22, [#allocation6], %s702_s7, %s702_s7, %s703_s8  }
  0x13   :  { %s704_s11 = smov [#allocation2]   ;;  %s705_s13 = smov [#allocation7]  }
  0x14   :  { %s22_s12 = sshll.u32 %s704_s11, 4  ;;  %s45_s14 = sshll.u32 %s705_s13, 4  ;;  %s23_s12 = int_to_ptr.vmem [resolvable:$true] %s22_s12  ;;  %s46_s14 = int_to_ptr.vmem [resolvable:$true] %s45_s14 }
  0x15   :  { %s629_s17 = scalar_lea.hbm %s904_s1, 128 }
  0x16   :  { %p630_p8 = scmp.ne.s32.totalorder %s904_s1, %s629_s17  ;;  %p633_p9 = scmp.lt.u32.totalorder %s629_s17, %s904_s1 }
  0x18   :  { %p635_p10 = pnand %p633_p9, %p630_p8 }
  0x1a   :  { %638 = shalt.err (!%p635_p10)
}
  0x1b   :  { %s639_s3 = scalar_lea.vmem %s23_s12, 128  ;;  %p644_p12 = scmp.lt.s32.totalorder %s23_s12, %s23_s12 }
  0x1c   :  { %p640_p11 = scmp.ne.s32.totalorder %s23_s12, %s639_s3  ;;  %p645_p13 = scmp.lt.s32.totalorder %s639_s3, %s639_s3 }
  0x1e   :  { %p646_p0 = por %p645_p13, %p644_p12 }
  0x20   :  { %p647_p1 = pnand %p646_p0, %p640_p11 }
  0x22   :  { %650 = shalt.err (!%p647_p1)
}
  0x23   :  { %25 = dma.hbm_to_vmem [thread:$0]  %s904_s1, 128, %s23_s12, [#allocation3]  }
  0x24   :  { %s651_s26 = scalar_lea.hbm %s907_s4, 1024 }
  0x25   :  { %p652_p2 = scmp.ne.s32.totalorder %s907_s4, %s651_s26  ;;  %p655_p3 = scmp.lt.u32.totalorder %s651_s26, %s907_s4 }
  0x27   :  { %p657_p4 = pnand %p655_p3, %p652_p2 }
  0x29   :  { %660 = shalt.err (!%p657_p4)
}
  0x2a   :  { %s661_s9 = scalar_lea.vmem %s46_s14, 1024  ;;  %p666_p6 = scmp.lt.s32.totalorder %s46_s14, %s46_s14 }
  0x2b   :  { %p662_p5 = scmp.ne.s32.totalorder %s46_s14, %s661_s9  ;;  %p667_p7 = scmp.lt.s32.totalorder %s661_s9, %s661_s9 }
  0x2d   :  { %p668_p8 = por %p667_p7, %p666_p6 }
  0x2f   :  { %p669_p9 = pnand %p668_p8, %p662_p5 }
  0x31   :  { %672 = shalt.err (!%p669_p9)
}
  0x32   :  { %51 = dma.hbm_to_vmem [thread:$0]  %s907_s4, 1024, %s46_s14, [#allocation6], %s702_s7, %s702_s7, %s703_s8  }
  0x33   :  { %695 = dma.done.wait [#allocation3], 128  }
  0x34   :  { %696 = vsyncadd [#allocation3], 4294967168 }
  0x35   :  { %697 = dma.done.wait [#allocation6], 2048  }
  0x36   :  { %698 = vsyncadd [#allocation6], 4294965248  ;;  %v706_v0 = vmov 2   ;;  %v707_v1 = vmov 0   ;;  %v708_v2 = vmov 0.0   ;;  %v800_v3 = vld [vmem:[#allocation2] sm:$0xff]  ;;  %v66_v40 = vlaneseq }
  0x37   :  { %570 = vset.pattern.permute.xlu1 %v706_v0  ;;  %568 = vset.pattern.permute.xlu0 %v707_v1  ;;  %v709_v4 = vmov 3   ;;  %v710_v5 = vmov 1   ;;  %v809_v6 = vld [vmem:[%s903_s0] sm:$0xff]  ;;  %v711_v7 = vmov 4   ;;  %v712_v8 = vmov 5   ;;  %v589_v11 = vld [vmem:[#allocation5] sm:$0xff]  }
  0x38   :  { %527 = vmatprep.subr.bf16.mxu0 %v708_v2  ;;  %507 = vmatprep.subr.bf16.mxu1 %v708_v2  ;;  %v713_v9 = vmov 7   ;;  %v714_v10 = vmov 6   ;;  %v715_v12 = vmov 10   ;;  %v590_v13 = vld [vmem:[#allocation5 + $0x8] sm:$0xff]   ;;  %v591_v14 = vld [vmem:[#allocation7] sm:$0xff]   ;;  %v592_v15 = vld [vmem:[#allocation5 + $0x10] sm:$0xff]  }
  0x39   :  { %139 = vperm.xlu1 %570, %v800_v3   ;;  %125 = vperm.xlu0 %568, %v800_v3   ;;  %v593_v16 = vld [vmem:[#allocation7 + $0x8] sm:$0xff]   ;;  %v716_v17 = vmov 8   ;;  %v594_v18 = vld [vmem:[#allocation5 + $0x18] sm:$0xff]   ;;  %v595_v19 = vld [vmem:[#allocation7 + $0x10] sm:$0xff]   ;;  %v717_v20 = vmov 9   ;;  %v718_v29 = vmov 11  }
  0x3a   :  { %528 = vmatpush3.bf16.msra.mxu0 %v589_v11  ;;  %508 = vmatpush3.bf16.msra.mxu1 %v591_v14  ;;  %v596_v21 = vld [vmem:[#allocation5 + $0x20] sm:$0xff]   ;;  %v597_v22 = vld [vmem:[#allocation7 + $0x18] sm:$0xff]   ;;  %v598_v23 = vld [vmem:[#allocation5 + $0x28] sm:$0xff]   ;;  %vm719_vm0 = vmmov 0   ;;  %v846_v42 = vand.u32 127, %v66_v40  ;;  %s720_s12 = smov [#allocation8]  }
  0x3b   :  { %529 = vmatprep.subr.bf16.mxu0 %v708_v2  ;;  %509 = vmatprep.subr.bf16.mxu1 %v708_v2  ;;  %v599_v24 = vld [vmem:[#allocation7 + $0x20] sm:$0xff]   ;;  %v600_v25 = vld [vmem:[#allocation5 + $0x30] sm:$0xff]   ;;  %v601_v26 = vld [vmem:[#allocation7 + $0x28] sm:$0xff]   ;;  %s442_s13 = sshll.u32 %s720_s12, 4  ;;  %s443_s13 = int_to_ptr.vmem [resolvable:$true] %s442_s13 }
  0x3c   :  { %v602_v27 = vld [vmem:[#allocation5 + $0x38] sm:$0xff]   ;;  %v603_v28 = vld [vmem:[#allocation7 + $0x30] sm:$0xff]   ;;  %543 = vmatprep.mubr.msk.bf16.mxu0 %vm719_vm0, %v708_v2  ;;  %523 = vmatprep.mubr.msk.bf16.mxu1 %vm719_vm0, %v708_v2  ;;  %s673_s14 = scalar_lea.vmem %s443_s13, 128  ;;  %p678_p11 = scmp.lt.s32.totalorder %s443_s13, %s443_s13 }
  0x3d   :  { %571 = vset.pattern.permute.xlu1 %v709_v4  ;;  %569 = vset.pattern.permute.xlu0 %v710_v5  ;;  %v604_v30 = vld [vmem:[#allocation7 + $0x38] sm:$0xff]   ;;  %p674_p10 = scmp.ne.s32.totalorder %s443_s13, %s673_s14  ;;  %p679_p12 = scmp.lt.s32.totalorder %s673_s14, %s673_s14 }
  0x3e   :  { %146 = vperm.xlu1 %571, %v800_v3   ;;  %132 = vperm.xlu0 %569, %v800_v3   ;;  %v418_v31 = vld [vmem:[%s905_s2] sm:$0xff] }
  0x3f   :  { %530 = vmatpush3.bf16.msra.mxu0 %v590_v13  ;;  %510 = vmatpush3.bf16.msra.mxu1 %v593_v16  ;;  %v419_v32 = vmax.f32 %v418_v31, 1.0  ;;  %p680_p13 = por %p679_p12, %p678_p11 }
  0x40   :  { %531 = vmatprep.subr.bf16.mxu0 %v708_v2  ;;  %511 = vmatprep.subr.bf16.mxu1 %v708_v2 }
  0x41   :  { %605 = vrcp.f32 %v419_v32  ;;  %p681_p0 = pnand %p680_p13, %p674_p10 }
  0x42   :  { %572 = vset.pattern.permute.xlu1 %v711_v7  ;;  %573 = vset.pattern.permute.xlu0 %v707_v1 }
  0x43   :  { %153 = vperm.xlu1 %572, %v800_v3   ;;  %69 = vperm.xlu0 %573, %v809_v6  }
  0x44   :  { %532 = vmatpush3.bf16.msra.mxu0 %v592_v15  ;;  %512 = vmatpush3.bf16.msra.mxu1 %v595_v19 }
  0x45   :  { %533 = vmatprep.subr.bf16.mxu0 %v708_v2  ;;  %513 = vmatprep.subr.bf16.mxu1 %v708_v2 }
  0x47   :  { %574 = vset.pattern.permute.xlu1 %v710_v5  ;;  %576 = vset.pattern.permute.xlu0 %v706_v0 }
  0x48   :  { %76 = vperm.xlu1 %574, %v809_v6   ;;  %83 = vperm.xlu0 %576, %v809_v6  }
  0x49   :  { %534 = vmatpush3.bf16.msra.mxu0 %v594_v18  ;;  %514 = vmatpush3.bf16.msra.mxu1 %v597_v22 }
  0x4a   :  { %535 = vmatprep.subr.bf16.mxu0 %v708_v2  ;;  %515 = vmatprep.subr.bf16.mxu1 %v708_v2 }
  0x4b   :  { %v606_v33 = vpop.eup %605 }
  0x4c   :  { %575 = vset.pattern.permute.xlu1 %v712_v8  ;;  %579 = vset.pattern.permute.xlu0 %v713_v9 }
  0x4d   :  { %160 = vperm.xlu1 %575, %v800_v3   ;;  %174 = vperm.xlu0 %579, %v800_v3  }
  0x4e   :  { %536 = vmatpush3.bf16.msra.mxu0 %v596_v21  ;;  %516 = vmatpush3.bf16.msra.mxu1 %v599_v24 }
  0x4f   :  { %537 = vmatprep.subr.bf16.mxu0 %v708_v2  ;;  %517 = vmatprep.subr.bf16.mxu1 %v708_v2 }
  0x51   :  { %577 = vset.pattern.permute.xlu1 %v714_v10  ;;  %582 = vset.pattern.permute.xlu0 %v712_v8 }
  0x52   :  { %167 = vperm.xlu1 %577, %v800_v3   ;;  %104 = vperm.xlu0 %582, %v809_v6  }
  0x53   :  { %538 = vmatpush3.bf16.msra.mxu0 %v598_v23  ;;  %518 = vmatpush3.bf16.msra.mxu1 %v601_v26 }
  0x54   :  { %539 = vmatprep.subr.bf16.mxu0 %v708_v2  ;;  %519 = vmatprep.subr.bf16.mxu1 %v708_v2 }
  0x56   :  { %578 = vset.pattern.permute.xlu1 %v709_v4  ;;  %585 = vset.pattern.permute.xlu0 %v715_v12 }
  0x57   :  { %90 = vperm.xlu1 %578, %v809_v6   ;;  %195 = vperm.xlu0 %585, %v800_v3  }
  0x58   :  { %540 = vmatpush3.bf16.msra.mxu0 %v600_v25  ;;  %520 = vmatpush3.bf16.msra.mxu1 %v603_v28 }
  0x59   :  { %541 = vmatprep.subr.bf16.mxu0 %v708_v2  ;;  %521 = vmatprep.subr.bf16.mxu1 %v708_v2 }
  0x5b   :  { %580 = vset.pattern.permute.xlu1 %v711_v7  ;;  %588 = vset.pattern.permute.xlu0 %v707_v1 }
  0x5c   :  { %97 = vperm.xlu1 %580, %v809_v6   ;;  %542 = vmatpush3.bf16.msra.mxu0 %v602_v27 }
  0x5d   :  { %522 = vmatpush3.bf16.msra.mxu1 %v604_v30  ;;  %423 = vperm.xlu0 %588, %v606_v33  }
  0x60   :  { %581 = vset.pattern.permute.xlu1 %v716_v17 }
  0x61   :  { %181 = vperm.xlu1 %581, %v800_v3  }
  0x65   :  { %583 = vset.pattern.permute.xlu1 %v717_v20 }
  0x66   :  { %188 = vperm.xlu1 %583, %v800_v3  }
  0x6a   :  { %584 = vset.pattern.permute.xlu1 %v714_v10 }
  0x6b   :  { %111 = vperm.xlu1 %584, %v809_v6  }
  0x6f   :  { %586 = vset.pattern.permute.xlu1 %v713_v9 }
  0x70   :  { %118 = vperm.xlu1 %586, %v809_v6  }
  0x74   :  { %587 = vset.pattern.permute.xlu1 %v718_v29 }
  0x75   :  { %202 = vperm.xlu1 %587, %v800_v3  }
  0xb8   :  { %v140_v34 = vpop.permute.xlu1 %139  ;;  %v126_v38 = vpop.permute.xlu0 %125 }
  0xb9   :  { %vm127_vm1 = vcmp.eq.s32.totalorder %v126_v38, %v846_v42  ;;  %vm141_vm3 = vcmp.eq.s32.totalorder %v140_v34, %v846_v42 }
  0xba   :  { %v460_v44 = vsel %vm127_vm1, 1.0, %v708_v2  ;;  %v462_v50 = vsel %vm141_vm3, 1.0, %v708_v2 }
  0xbd   :  { %v147_v35 = vpop.permute.xlu1 %146  ;;  %v133_v41 = vpop.permute.xlu0 %132 }
  0xbe   :  { %vm134_vm2 = vcmp.eq.s32.totalorder %v133_v41, %v846_v42  ;;  %vm148_vm6 = vcmp.eq.s32.totalorder %v147_v35, %v846_v42 }
  0xbf   :  { %v461_v45 = vsel %vm134_vm2, 1.0, %v708_v2  ;;  %v463_v55 = vsel %vm148_vm6, 1.0, %v708_v2 }
  0xc0   :  { %v137_v48 = vadd.f32 %v461_v45, %v460_v44 }
  0xc2   :  { %v154_v36 = vpop.permute.xlu1 %153  ;;  %v70_v47 = vpop.permute.xlu0 %69  ;;  %v144_v51 = vadd.f32 %v462_v50, %v137_v48 }
  0xc3   :  { %vm71_vm4 = vcmp.eq.s32.totalorder %v70_v47, %v846_v42  ;;  %vm155_vm7 = vcmp.eq.s32.totalorder %v154_v36, %v846_v42 }
  0xc4   :  { %v452_v53 = vsel %vm71_vm4, 1.0, %v708_v2  ;;  %v151_v57 = vadd.f32 %v463_v55, %v144_v51  ;;  %v464_v59 = vsel %vm155_vm7, 1.0, %v708_v2 }
  0xc6   :  { %v158_v63 = vadd.f32 %v464_v59, %v151_v57 }
  0xc7   :  { %v77_v37 = vpop.permute.xlu1 %76  ;;  %v84_v52 = vpop.permute.xlu0 %83 }
  0xc8   :  { %vm78_vm5 = vcmp.eq.s32.totalorder %v77_v37, %v846_v42  ;;  %vm85_vm8 = vcmp.eq.s32.totalorder %v84_v52, %v846_v42 }
  0xc9   :  { %v453_v54 = vsel %vm78_vm5, 1.0, %v708_v2  ;;  %v454_v61 = vsel %vm85_vm8, 1.0, %v708_v2 }
  0xca   :  { %v81_v60 = vadd.f32 %v453_v54, %v452_v53 }
  0xcc   :  { %v161_v39 = vpop.permute.xlu1 %160  ;;  %v175_v58 = vpop.permute.xlu0 %174  ;;  %v88_v4 = vadd.f32 %v454_v61, %v81_v60 }
  0xcd   :  { %vm162_vm9 = vcmp.eq.s32.totalorder %v161_v39, %v846_v42  ;;  %vm176_vm13 = vcmp.eq.s32.totalorder %v175_v58, %v846_v42 }
  0xce   :  { %v465_v62 = vsel %vm162_vm9, 1.0, %v708_v2  ;;  %v467_v10 = vsel %vm176_vm13, 1.0, %v708_v2 }
  0xcf   :  { %v165_v6 = vadd.f32 %v465_v62, %v158_v63 }
  0xd1   :  { %v168_v43 = vpop.permute.xlu1 %167  ;;  %v105_v1 = vpop.permute.xlu0 %104 }
  0xd2   :  { %vm169_vm11 = vcmp.eq.s32.totalorder %v168_v43, %v846_v42  ;;  %vm106_vm14 = vcmp.eq.s32.totalorder %v105_v1, %v846_v42  ;;  %v488_v43 = vld [vmem:[%s908_s5] ss:$0 sm:$0xff] }
  0xd3   :  { %v466_v5 = vsel %vm169_vm11, 1.0, %v708_v2  ;;  %v457_v13 = vsel %vm106_vm14, 1.0, %v708_v2 }
  0xd4   :  { %v172_v9 = vadd.f32 %v466_v5, %v165_v6 }
  0xd6   :  { %v91_v46 = vpop.permute.xlu1 %90  ;;  %v196_v15 = vpop.permute.xlu0 %195  ;;  %v179_v16 = vadd.f32 %v467_v10, %v172_v9 }
  0xd7   :  { %vm92_vm10 = vcmp.eq.s32.totalorder %v91_v46, %v846_v42  ;;  %vm197_vm2 = vcmp.eq.s32.totalorder %v196_v15, %v846_v42 }
  0xd8   :  { %v455_v0 = vsel %vm92_vm10, 1.0, %v708_v2  ;;  %v470_v25 = vsel %vm197_vm2, 1.0, %v708_v2 }
  0xd9   :  { %v95_v8 = vadd.f32 %v455_v0, %v88_v4 }
  0xdb   :  { %v98_v49 = vpop.permute.xlu1 %97 }
  0xdc   :  { %vm99_vm12 = vcmp.eq.s32.totalorder %v98_v49, %v846_v42  ;;  %v424_v38 = vpop.permute.xlu0 %423 }
  0xdd   :  { %v456_v7 = vsel %vm99_vm12, 1.0, %v708_v2 }
  0xde   :  { %v102_v11 = vadd.f32 %v456_v7, %v95_v8 }
  0xe0   :  { %v182_v56 = vpop.permute.xlu1 %181  ;;  %v109_v18 = vadd.f32 %v457_v13, %v102_v11 }
  0xe1   :  { %vm183_vm15 = vcmp.eq.s32.totalorder %v182_v56, %v846_v42 }
  0xe2   :  { %v468_v14 = vsel %vm183_vm15, 1.0, %v708_v2 }
  0xe3   :  { %v186_v20 = vadd.f32 %v468_v14, %v179_v16 }
  0xe5   :  { %v189_v3 = vpop.permute.xlu1 %188 }
  0xe6   :  { %vm190_vm0 = vcmp.eq.s32.totalorder %v189_v3, %v846_v42 }
  0xe7   :  { %v469_v19 = vsel %vm190_vm0, 1.0, %v708_v2 }
  0xe8   :  { %v193_v23 = vadd.f32 %v469_v19, %v186_v20 }
  0xea   :  { %v112_v12 = vpop.permute.xlu1 %111  ;;  %v200_v29 = vadd.f32 %v470_v25, %v193_v23 }
  0xeb   :  { %vm113_vm1 = vcmp.eq.s32.totalorder %v112_v12, %v846_v42 }
  0xec   :  { %v458_v17 = vsel %vm113_vm1, 1.0, %v708_v2 }
  0xed   :  { %v116_v22 = vadd.f32 %v458_v17, %v109_v18 }
  0xef   :  { %v119_v21 = vpop.permute.xlu1 %118 }
  0xf0   :  { %vm120_vm3 = vcmp.eq.s32.totalorder %v119_v21, %v846_v42 }
  0xf1   :  { %v459_v24 = vsel %vm120_vm3, 1.0, %v708_v2 }
  0xf2   :  { %v123_v26 = vadd.f32 %v459_v24, %v116_v22 }
  0xf4   :  { %v208_v27 = vpack.c.bf16 %v123_v26, %v123_v26  ;;  %v203_v28 = vpop.permute.xlu1 %202 }
  0xf5   :  { %vm204_vm4 = vcmp.eq.s32.totalorder %v203_v28, %v846_v42 }
  0xf6   :  { %v471_v30 = vsel %vm204_vm4, 1.0, %v708_v2  ;;  %544 = vmatmul.mubr.bf16.vlgmr.msra.gmra.mrb[0].mxu0 %v208_v27 }
  0xf7   :  { %v207_v31 = vadd.f32 %v471_v30, %v200_v29 }
  0xf9   :  { %v225_v32 = vpack.c.bf16 %v207_v31, %v207_v31 }
  0xfb   :  { %524 = vmatmul.mubr.bf16.vlgmr.msra.gmra.mrb[0].mxu1 %v225_v32 }
 0x1c9   :  { %v412_v33 = vpop.f32.mrb[0].mxu0 }
 0x1ca   :  { %v545_v34 = vpop.f32.mrb[1].mxu0 }
 0x1cb   :  { %v415_v35 = vpop.f32.mrb[2].mxu0 }
 0x1cc   :  { %v546_v36 = vpop.f32.mrb[3].mxu0 }
 0x1ce   :  { %v324_v37 = vpop.f32.mrb[0].mxu1 }
 0x1cf   :  { %v413_v39 = vadd.f32 %v412_v33, %v324_v37  ;;  %v525_v40 = vpop.f32.mrb[1].mxu1 }
 0x1d0   :  { %v327_v41 = vpop.f32.mrb[2].mxu1 }
 0x1d1   :  { %v426_v2 = vmul.f32 %v424_v38, %v413_v39  ;;  %v526_v42 = vpop.f32.mrb[3].mxu1 }
 0x1d3   :  { %v434_v44 = vadd.f32 %v488_v43, %v426_v2 }
 0x1d5   :  { %435 = vst [vmem:[#allocation8] sm:$0xff] %v434_v44 }
 0x1d6   :  { %684 = shalt.err (!%p681_p0)
}
 0x1d7   :  { %s685_s17 = scalar_lea.hbm %s909_s6, 128 }
 0x1d8   :  { %p686_p1 = scmp.ne.s32.totalorder %s909_s6, %s685_s17  ;;  %p689_p2 = scmp.lt.u32.totalorder %s685_s17, %s909_s6 }
 0x1da   :  { %p691_p3 = pnand %p689_p2, %p686_p1 }
 0x1dc   :  { %694 = shalt.err (!%p691_p3)
}
 0x1dd   :  { %445 = dma.vmem_to_hbm [thread:$0]  %s443_s13, 128, %s909_s6, [#allocation4]  }
 0x1de   :  { %699 = dma.done.wait [#allocation4], 128  }
 0x1df   :  { %700 = vsyncadd [#allocation4], 4294967168 }
 0x1e0   :  { %449 = vsyncpa [#allocation3], 1 }
 0x1e1   :  { %450 = vsyncpa [#allocation6], 1 }
 0x1e2   :  { %451 = vsyncpa [#allocation4], 1 }

</bundles_post_ra>
